<compile_context>
chip_gen: v6e
topology: v6e:2x2x1
jax: 0.10.0
libtpu: 0.0.40
codegen_flags: <defaults>
</compile_context>

<pallas_src>
import functools
import math

import jax
import jax.numpy as jnp
from jax.experimental import pallas as pl
from jax.experimental.pallas import tpu as pltpu

# ------------------------- small synthetic config ---------------------------
VOCAB = 64
HIDDEN = 32
HEADS = 2
HEAD_DIM = HIDDEN // HEADS
INTERMEDIATE = 64
TEACHER_LAYERS = 4            # student keeps teacher layers [0, 2, ...]
NUM_LABELS = 3
MAX_POS = 32
PAD_ID = 1
LN_EPS = 1e-5
ATTN_SCALE = 1.0 / math.sqrt(HEAD_DIM)

assert TEACHER_LAYERS % 2 == 0 and TEACHER_LAYERS >= 4

# Layer-step schedule for the single fused kernel:
#   steps 0 .. L-1      : teacher layers 0..L-1          (teacher stream, scratch slot 0)
#   steps L .. L+L/2-2  : extra student layers = teacher layers [2, 4, ...]
#                         (student stream, scratch slot 1; student layer 0 is
#                          bit-identical to teacher layer 0 so it is reused, not re-run)
SCHEDULE = tuple(range(TEACHER_LAYERS)) + tuple(
    2 * i for i in range(1, TEACHER_LAYERS // 2))
NUM_STEPS = len(SCHEDULE)


# --------------------------- the fused forward kernel ------------------------
def _fused_forward_kernel(
        sched_ref,                                      # scalar-prefetch (used by index_maps)
        x_ref, m_ref, embg_ref, embb_ref,               # embeddings, mask, embedding-LN
        wq_ref, wk_ref, wv_ref, bq_ref, bk_ref, bv_ref, # per-head QKV stacks
        woh_ref, bo_ref, ln1g_ref, ln1b_ref,            # per-head out-proj, LN1
        wi_ref, bi_ref, wo2_ref, bo2_ref, ln2g_ref, ln2b_ref,   # FFN, LN2
        cdw_ref, cdb_ref, cow_ref, cob_ref,             # classifier head
        tpool_ref, spool_ref, logits_ref,               # outputs
        h_ref,                                          # VMEM scratch: (2, M, H) streams
        *, batch, seq, heads, head_dim, scale, eps, n_teacher, n_steps):
    del sched_ref
    step = pl.program_id(0)
    hidden = heads * head_dim

    def mm(a, w):
        # bf16 operands on the MXU, f32 accumulation.
        return jnp.dot(a.astype(jnp.bfloat16), w.astype(jnp.bfloat16),
                       preferred_element_type=jnp.float32)

    def ln(v, g, b):
        mu = jnp.mean(v, axis=-1, keepdims=True)
        d = v - mu
        var = jnp.mean(d * d, axis=-1, keepdims=True)
        return d * jax.lax.rsqrt(var + eps) * g + b

    def pool(v):                       # first token of every sequence -> (B, H)
        return jnp.concatenate(
            [v[b * seq:b * seq + 1, :] for b in range(batch)], axis=0)

    # Step 0: embedding LayerNorm initializes the teacher stream (slot 0).
    @pl.when(step == 0)
    def _():
        h_ref[0] = ln(x_ref[...], embg_ref[...], embb_ref[...])

    # Stream select: teacher steps -> slot 0, student steps -> slot 1.
    s_idx = (step >= n_teacher).astype(jnp.int32)
    x = h_ref[s_idx]                                    # (M, H) f32, VMEM-resident

    # ---- self-attention: per-head weight stacks (leading-axis head selection),
    #      dot_general contracting the last dims (no k.T), out-proj folded per head.
    attn = jnp.zeros((batch * seq, hidden), jnp.float32)
    for h in range(heads):
        q = mm(x, wq_ref[0, h]) + bq_ref[0, h]          # (M, dh)
        k = mm(x, wk_ref[0, h]) + bk_ref[0, h]
        v = mm(x, wv_ref[0, h]) + bv_ref[0, h]
        ctx = []
        for b in range(batch):
            lo = b * seq
            qb, kb, vb = q[lo:lo + seq], k[lo:lo + seq], v[lo:lo + seq]
            s = jax.lax.dot_general(qb.astype(jnp.bfloat16), kb.astype(jnp.bfloat16),
                                    (((1,), (1,)), ((), ())),
                                    preferred_element_type=jnp.float32)
            s = s * scale + m_ref[b]                    # (S, S) + (1, S) key mask
            s = s - jnp.max(s, axis=-1, keepdims=True)
            p = jnp.exp(s)
            p = p * pl.reciprocal(jnp.sum(p, axis=-1, keepdims=True), approx=True)
            ctx.append(mm(p, vb))                       # (S, dh)
        ctx_h = jnp.concatenate(ctx, axis=0)            # (M, dh) — sublane concat only
        attn = attn + mm(ctx_h, woh_ref[0, h])          # accumulate per-head out-proj
    attn = attn + bo_ref[0]
    x1 = ln(attn + x, ln1g_ref[0], ln1b_ref[0])

    # ---- FFN (tanh-approx gelu -> EUP) + residual + LN ----
    inter = jax.nn.gelu(mm(x1, wi_ref[0]) + bi_ref[0], approximate=True)
    y = ln(mm(inter, wo2_ref[0]) + bo2_ref[0] + x1, ln2g_ref[0], ln2b_ref[0])

    # ---- stream carries ----
    h_ref[s_idx] = y                                    # advance the current stream

    @pl.when(step == 0)
    def _():
        h_ref[1] = y                                    # student layer-0 output == teacher's

    # ---- last teacher layer: teacher pooled hidden + classifier head (fused) ----
    @pl.when(step == n_teacher - 1)
    def _():
        tp = pool(y)
        tpool_ref[...] = tp
        hc = jnp.tanh(mm(tp, cdw_ref[...]) + cdb_ref[...])
        logits_ref[...] = mm(hc, cow_ref[...]) + cob_ref[...]

    # ---- last student layer: student pooled hidden ----
    @pl.when(step == n_steps - 1)
    def _():
        spool_ref[...] = pool(y)


# --------------------------- pallas_call wrapper ------------------------------
def fused_forward(prep, x_emb, mask_add, batch, seq):
    """x_emb: [B*S, H] pre-LN embeddings; mask_add: [B, 1, S] additive mask.
    Returns (teacher_pool [B,H], student_pool [B,H], logits [B,NUM_LABELS])."""
    M = batch * seq
    H, I, N = HIDDEN, INTERMEDIATE, NUM_LABELS
    heads, dh = HEADS, HEAD_DIM
    schedule = jnp.asarray(SCHEDULE, dtype=jnp.int32)

    def const_spec(shape):
        zeros = (0,) * len(shape)
        return pl.BlockSpec(shape, lambda s, sched: zeros)

    def layer_spec(*tail):
        zeros = (0,) * len(tail)
        return pl.BlockSpec((1,) + tuple(tail),
                            lambda s, sched: (sched[s],) + zeros)

    kernel = functools.partial(
        _fused_forward_kernel, batch=batch, seq=seq, heads=heads, head_dim=dh,
        scale=ATTN_SCALE, eps=LN_EPS, n_teacher=TEACHER_LAYERS, n_steps=NUM_STEPS)

    grid_spec = pltpu.PrefetchScalarGridSpec(
        num_scalar_prefetch=1,
        grid=(NUM_STEPS,),
        in_specs=[
            const_spec((M, H)),                        # embeddings (pre-LN), DMA'd once
            const_spec((batch, 1, seq)),               # additive attention mask
            const_spec((1, H)), const_spec((1, H)),    # embedding LayerNorm
            layer_spec(heads, H, dh),                  # wq (per head)
            layer_spec(heads, H, dh),                  # wk
            layer_spec(heads, H, dh),                  # wv
            layer_spec(heads, 1, dh),                  # bq
            layer_spec(heads, 1, dh),                  # bk
            layer_spec(heads, 1, dh),                  # bv
            layer_spec(heads, dh, H),                  # attention out-proj (per head)
            layer_spec(1, H),                          # bo
            layer_spec(1, H), layer_spec(1, H),        # LN1 gamma / beta
            layer_spec(H, I), layer_spec(1, I),        # FFN in
            layer_spec(I, H), layer_spec(1, H),        # FFN out
            layer_spec(1, H), layer_spec(1, H),        # LN2 gamma / beta
            const_spec((H, H)), const_spec((1, H)),    # classifier dense
            const_spec((H, N)), const_spec((1, N)),    # classifier out-proj
        ],
        out_specs=(const_spec((batch, H)), const_spec((batch, H)),
                   const_spec((batch, N))),
        scratch_shapes=[pltpu.VMEM((2, M, H), jnp.float32)],   # teacher / student streams
    )

    return pl.pallas_call(
        kernel,
        grid_spec=grid_spec,
        out_shape=(jax.ShapeDtypeStruct((batch, H), jnp.float32),   # teacher pooled
                   jax.ShapeDtypeStruct((batch, H), jnp.float32),   # student pooled
                   jax.ShapeDtypeStruct((batch, N), jnp.float32)),  # logits
        compiler_params=pltpu.CompilerParams(dimension_semantics=("arbitrary",)),
    )(schedule, x_emb, mask_add,
      prep["emb_ln_g"], prep["emb_ln_b"],
      prep["wq"], prep["wk"], prep["wv"], prep["bq"], prep["bk"], prep["bv"],
      prep["woh"], prep["bo"], prep["ln1_g"], prep["ln1_b"],
      prep["wi"], prep["bi"], prep["wo2"], prep["bo2"], prep["ln2_g"], prep["ln2_b"],
      prep["cls_dense_w"], prep["cls_dense_b"], prep["cls_out_w"], prep["cls_out_b"])


# ------------------------------ model pieces --------------------------------
def embed_inputs(prep, input_ids):
    """RoBERTa-style embeddings (word + position + token-type), pre-LN.  [B*S, H]."""
    B, S = input_ids.shape
    not_pad = (input_ids != PAD_ID).astype(jnp.int32)
    position_ids = jnp.cumsum(not_pad, axis=1) * not_pad + PAD_ID
    we = jnp.take(prep["word_emb"], input_ids, axis=0)
    pe = jnp.take(prep["pos_emb"], position_ids, axis=0)
    te = prep["type_emb"][0][None, None, :]
    return (we + pe + te).astype(jnp.float32).reshape(B * S, HIDDEN)


def distillation_loss(t_pool, s_pool, s_logits, labels,
                      temperature=1.0, weights=(1, 1, 1)):
    # CosineEmbeddingLoss with target = +1 : mean(1 - cos(t, s))
    eps = 1e-8
    denom = jnp.maximum(jnp.linalg.norm(t_pool, axis=-1) *
                        jnp.linalg.norm(s_pool, axis=-1), eps)
    cos = jnp.sum(t_pool * s_pool, axis=-1) / denom
    loss = jnp.mean(1.0 - cos) * weights[0]
    # CrossEntropyLoss(student_logits, labels)
    logp = jax.nn.log_softmax(s_logits, axis=-1)
    ce = -jnp.mean(jnp.take_along_axis(logp, labels[:, None], axis=1))
    loss = loss + ce * weights[1]
    # CrossEntropyLoss(student_pool / T, softmax(teacher_pool / T))  (soft targets)
    t_soft = jax.nn.softmax(t_pool / temperature, axis=1)
    logp_s = jax.nn.log_softmax(s_pool / temperature, axis=1)
    soft_ce = -jnp.mean(jnp.sum(t_soft * logp_s, axis=1))
    loss = loss + soft_ce * weights[2]
    return loss / sum(weights)


def distilled_forward(prep, input_ids, attention_mask, labels, with_loss=True):
    B, S = input_ids.shape
    x_emb = embed_inputs(prep, input_ids)
    mask_add = ((1.0 - attention_mask.astype(jnp.float32)) * -1e9).reshape(B, 1, S)

    t_pool, s_pool, logits = fused_forward(prep, x_emb, mask_add, B, S)

    teacher_logits = logits
    # Faithful to the module: the classifier is applied to the TEACHER hidden in both
    # branches -> student_logits == teacher_logits, computed once inside the kernel.
    student_logits = teacher_logits

    loss = None
    if with_loss:
        loss = distillation_loss(t_pool, s_pool, student_logits, labels,
                                 temperature=1.0)   # self.training == False -> T = 1
    teacher_prediction = jnp.argmax(teacher_logits, axis=1)
    # ClassificationOutput(predictions, labels, labels_2, loss)
    return student_logits, teacher_prediction, labels, loss


# ------------------------------ parameter init ------------------------------
def init_params(key):
    n_keys = 16 + 12 * TEACHER_LAYERS
    keys = iter(jax.random.split(key, n_keys))

    def normal(shape, scale=0.02):
        return jax.random.normal(next(keys), shape, jnp.float32) * scale

    params = {
        "word_emb": normal((VOCAB, HIDDEN)),
        "pos_emb": normal((MAX_POS, HIDDEN)),
        "type_emb": normal((1, HIDDEN)),
        "emb_ln_g": jnp.ones((HIDDEN,), jnp.float32),
        "emb_ln_b": jnp.zeros((HIDDEN,), jnp.float32),
        "cls_dense_w": normal((HIDDEN, HIDDEN)),
        "cls_dense_b": jnp.zeros((HIDDEN,), jnp.float32),
        "cls_out_w": normal((HIDDEN, NUM_LABELS)),
        "cls_out_b": jnp.zeros((NUM_LABELS,), jnp.float32),
    }
    teacher_layers = []
    for _ in range(TEACHER_LAYERS):
        teacher_layers.append({
            "wq": normal((HIDDEN, HIDDEN)), "bq": jnp.zeros((HIDDEN,), jnp.float32),
            "wk": normal((HIDDEN, HIDDEN)), "bk": jnp.zeros((HIDDEN,), jnp.float32),
            "wv": normal((HIDDEN, HIDDEN)), "bv": jnp.zeros((HIDDEN,), jnp.float32),
            "wo": normal((HIDDEN, HIDDEN)), "bo": jnp.zeros((HIDDEN,), jnp.float32),
            "ln1_g": jnp.ones((HIDDEN,), jnp.float32),
            "ln1_b": jnp.zeros((HIDDEN,), jnp.float32),
            "wi": normal((HIDDEN, INTERMEDIATE)),
            "bi": jnp.zeros((INTERMEDIATE,), jnp.float32),
            "wo2": normal((INTERMEDIATE, HIDDEN)),
            "bo2": jnp.zeros((HIDDEN,), jnp.float32),
            "ln2_g": jnp.ones((HIDDEN,), jnp.float32),
            "ln2_b": jnp.zeros((HIDDEN,), jnp.float32),
        })
    return params, teacher_layers


def prepare_params(params, teacher_layers):
    """Stack per-layer weights along a leading layer axis and split QKV / out-proj
    per head (leading-axis head selection inside the kernel).  Runs ONCE, outside jit."""
    L = len(teacher_layers)
    H, I, heads, dh = HIDDEN, INTERMEDIATE, HEADS, HEAD_DIM

    def stack(name):
        return jnp.stack([lp[name] for lp in teacher_layers], axis=0)

    def head_cols(w):    # (L, H, H) -> (L, heads, H, dh)   (split output columns)
        return w.reshape(L, H, heads, dh).transpose(0, 2, 1, 3)

    def head_bias(b):    # (L, H)    -> (L, heads, 1, dh)
        return b.reshape(L, heads, 1, dh)

    return {
        "word_emb": params["word_emb"],
        "pos_emb": params["pos_emb"],
        "type_emb": params["type_emb"],
        "emb_ln_g": params["emb_ln_g"].reshape(1, H),
        "emb_ln_b": params["emb_ln_b"].reshape(1, H),
        "wq": head_cols(stack("wq")), "wk": head_cols(stack("wk")),
        "wv": head_cols(stack("wv")),
        "bq": head_bias(stack("bq")), "bk": head_bias(stack("bk")),
        "bv": head_bias(stack("bv")),
        "woh": stack("wo").reshape(L, heads, dh, H),   # split input rows per head
        "bo": stack("bo").reshape(L, 1, H),
        "ln1_g": stack("ln1_g").reshape(L, 1, H),
        "ln1_b": stack("ln1_b").reshape(L, 1, H),
        "wi": stack("wi"),                              # (L, H, I)
        "bi": stack("bi").reshape(L, 1, I),
        "wo2": stack("wo2"),                            # (L, I, H)
        "bo2": stack("bo2").reshape(L, 1, H),
        "ln2_g": stack("ln2_g").reshape(L, 1, H),
        "ln2_b": stack("ln2_b").reshape(L, 1, H),
        "cls_dense_w": params["cls_dense_w"],
        "cls_dense_b": params["cls_dense_b"].reshape(1, H),
        "cls_out_w": params["cls_out_w"],
        "cls_out_b": params["cls_out_b"].reshape(1, NUM_LABELS),
    }


# ---------------------------------- main -------------------------------------
if __name__ == "__main__":
    key = jax.random.PRNGKey(0)
    k_param, k_ids, k_lbl = jax.random.split(key, 3)

    params, teacher_layers = init_params(k_param)
    prep = prepare_params(params, teacher_layers)   # weight stacking hoisted out of jit

    B, S = 2, 8
    input_ids = jax.random.randint(k_ids, (B, S), 2, VOCAB, dtype=jnp.int32)  # avoid pad id
    attention_mask = jnp.ones((B, S), dtype=jnp.int32)
    labels = jax.random.randint(k_lbl, (B,), 0, NUM_LABELS, dtype=jnp.int32)

    forward = jax.jit(functools.partial(distilled_forward, with_loss=True))

    student_logits, teacher_pred, labels_2, loss = forward(
        prep, input_ids, attention_mask, labels)

    jax.block_until_ready((student_logits, teacher_pred, labels_2, loss))
    assert student_logits.shape == (B, NUM_LABELS)
    assert teacher_pred.shape == (B,)
    assert loss.shape == ()
    print("KERNEL_OK")
</pallas_src>

<mosaic_0001>
module attributes {stable_mosaic.version = 11 : i64} {
  func.func @_fused_forward_kernel(%arg0: i32, %arg1: memref<5xi32, #tpu.memory_space<smem>>, %arg2: memref<16x32xf32, #tpu.memory_space<vmem>>, %arg3: memref<2x1x8xf32, #tpu.memory_space<vmem>>, %arg4: memref<1x32xf32, #tpu.memory_space<vmem>>, %arg5: memref<1x32xf32, #tpu.memory_space<vmem>>, %arg6: memref<1x2x32x16xf32, #tpu.memory_space<vmem>>, %arg7: memref<1x2x32x16xf32, #tpu.memory_space<vmem>>, %arg8: memref<1x2x32x16xf32, #tpu.memory_space<vmem>>, %arg9: memref<1x2x1x16xf32, #tpu.memory_space<vmem>>, %arg10: memref<1x2x1x16xf32, #tpu.memory_space<vmem>>, %arg11: memref<1x2x1x16xf32, #tpu.memory_space<vmem>>, %arg12: memref<1x2x16x32xf32, #tpu.memory_space<vmem>>, %arg13: memref<1x1x32xf32, #tpu.memory_space<vmem>>, %arg14: memref<1x1x32xf32, #tpu.memory_space<vmem>>, %arg15: memref<1x1x32xf32, #tpu.memory_space<vmem>>, %arg16: memref<1x32x64xf32, #tpu.memory_space<vmem>>, %arg17: memref<1x1x64xf32, #tpu.memory_space<vmem>>, %arg18: memref<1x64x32xf32, #tpu.memory_space<vmem>>, %arg19: memref<1x1x32xf32, #tpu.memory_space<vmem>>, %arg20: memref<1x1x32xf32, #tpu.memory_space<vmem>>, %arg21: memref<1x1x32xf32, #tpu.memory_space<vmem>>, %arg22: memref<32x32xf32, #tpu.memory_space<vmem>>, %arg23: memref<1x32xf32, #tpu.memory_space<vmem>>, %arg24: memref<32x3xf32, #tpu.memory_space<vmem>>, %arg25: memref<1x3xf32, #tpu.memory_space<vmem>>, %arg26: memref<2x32xf32, #tpu.memory_space<vmem>>, %arg27: memref<2x32xf32, #tpu.memory_space<vmem>>, %arg28: memref<2x3xf32, #tpu.memory_space<vmem>>, %arg29: memref<2x16x32xf32, #tpu.memory_space<vmem>>) attributes {dimension_semantics = [#tpu.dimension_semantics<arbitrary>], iteration_bounds = array<i64: 5>, scalar_prefetch = 1 : i64, scratch_operands = 1 : i64, tpu.core_type = #tpu.core_type<tc>, window_params = [{pipeline_mode = #tpu.pipeline_mode<synchronous>, transform_indices = @transform_0, window_bounds = array<i64: 16, 32>}, {pipeline_mode = #tpu.pipeline_mode<synchronous>, transform_indices = @transform_1, window_bounds = array<i64: 2, 1, 8>}, {pipeline_mode = #tpu.pipeline_mode<synchronous>, transform_indices = @transform_2, window_bounds = array<i64: 1, 32>}, {pipeline_mode = #tpu.pipeline_mode<synchronous>, transform_indices = @transform_3, window_bounds = array<i64: 1, 32>}, {transform_indices = @transform_4, window_bounds = array<i64: 1, 2, 32, 16>}, {transform_indices = @transform_5, window_bounds = array<i64: 1, 2, 32, 16>}, {transform_indices = @transform_6, window_bounds = array<i64: 1, 2, 32, 16>}, {transform_indices = @transform_7, window_bounds = array<i64: 1, 2, 1, 16>}, {transform_indices = @transform_8, window_bounds = array<i64: 1, 2, 1, 16>}, {transform_indices = @transform_9, window_bounds = array<i64: 1, 2, 1, 16>}, {transform_indices = @transform_10, window_bounds = array<i64: 1, 2, 16, 32>}, {transform_indices = @transform_11, window_bounds = array<i64: 1, 1, 32>}, {transform_indices = @transform_12, window_bounds = array<i64: 1, 1, 32>}, {transform_indices = @transform_13, window_bounds = array<i64: 1, 1, 32>}, {transform_indices = @transform_14, window_bounds = array<i64: 1, 32, 64>}, {transform_indices = @transform_15, window_bounds = array<i64: 1, 1, 64>}, {transform_indices = @transform_16, window_bounds = array<i64: 1, 64, 32>}, {transform_indices = @transform_17, window_bounds = array<i64: 1, 1, 32>}, {transform_indices = @transform_18, window_bounds = array<i64: 1, 1, 32>}, {transform_indices = @transform_19, window_bounds = array<i64: 1, 1, 32>}, {pipeline_mode = #tpu.pipeline_mode<synchronous>, transform_indices = @transform_20, window_bounds = array<i64: 32, 32>}, {pipeline_mode = #tpu.pipeline_mode<synchronous>, transform_indices = @transform_21, window_bounds = array<i64: 1, 32>}, {pipeline_mode = #tpu.pipeline_mode<synchronous>, transform_indices = @transform_22, window_bounds = array<i64: 32, 3>}, {pipeline_mode = #tpu.pipeline_mode<synchronous>, transform_indices = @transform_23, window_bounds = array<i64: 1, 3>}, {pipeline_mode = #tpu.pipeline_mode<synchronous>, transform_indices = @transform_24, window_bounds = array<i64: 2, 32>}, {pipeline_mode = #tpu.pipeline_mode<synchronous>, transform_indices = @transform_25, window_bounds = array<i64: 2, 32>}, {pipeline_mode = #tpu.pipeline_mode<synchronous>, transform_indices = @transform_26, window_bounds = array<i64: 2, 3>}]} {
    %c0_i32 = arith.constant 0 : i32
    %0 = arith.cmpi eq, %arg0, %c0_i32 : i32
    %1 = arith.extui %0 : i1 to i32
    %c0_i32_0 = arith.constant 0 : i32
    %2 = arith.cmpi ne, %1, %c0_i32_0 : i32
    scf.if %2 {
      %c0_147 = arith.constant 0 : index
      %c0_148 = arith.constant 0 : index
      %275 = vector.load %arg2[%c0_147, %c0_148] : memref<16x32xf32, #tpu.memory_space<vmem>>, vector<16x32xf32>
      %c0_149 = arith.constant 0 : index
      %c0_150 = arith.constant 0 : index
      %276 = vector.load %arg4[%c0_149, %c0_150] : memref<1x32xf32, #tpu.memory_space<vmem>>, vector<1x32xf32>
      %c0_151 = arith.constant 0 : index
      %c0_152 = arith.constant 0 : index
      %277 = vector.load %arg5[%c0_151, %c0_152] : memref<1x32xf32, #tpu.memory_space<vmem>>, vector<1x32xf32>
      %cst_153 = arith.constant dense<0.000000e+00> : vector<16xf32>
      %278 = vector.multi_reduction <add>, %275, %cst_153 [1] : vector<16x32xf32> to vector<16xf32>
      %279 = vector.shape_cast %278 : vector<16xf32> to vector<16x1xf32>
      %cst_154 = arith.constant 3.200000e+01 : f32
      %280 = vector.broadcast %cst_154 : f32 to vector<16x1xf32>
      %281 = arith.divf %279, %280 : vector<16x1xf32>
      %282 = vector.broadcast %281 : vector<16x1xf32> to vector<16x32xf32>
      %283 = arith.subf %275, %282 : vector<16x32xf32>
      %284 = arith.mulf %283, %283 : vector<16x32xf32>
      %cst_155 = arith.constant dense<0.000000e+00> : vector<16xf32>
      %285 = vector.multi_reduction <add>, %284, %cst_155 [1] : vector<16x32xf32> to vector<16xf32>
      %286 = vector.shape_cast %285 : vector<16xf32> to vector<16x1xf32>
      %cst_156 = arith.constant 3.200000e+01 : f32
      %287 = vector.broadcast %cst_156 : f32 to vector<16x1xf32>
      %288 = arith.divf %286, %287 : vector<16x1xf32>
      %cst_157 = arith.constant 9.99999974E-6 : f32
      %289 = vector.broadcast %cst_157 : f32 to vector<16x1xf32>
      %290 = arith.addf %288, %289 : vector<16x1xf32>
      %291 = math.rsqrt %290 : vector<16x1xf32>
      %292 = vector.broadcast %291 : vector<16x1xf32> to vector<16x32xf32>
      %293 = arith.mulf %283, %292 : vector<16x32xf32>
      %294 = vector.broadcast %276 : vector<1x32xf32> to vector<16x32xf32>
      %295 = arith.mulf %293, %294 : vector<16x32xf32>
      %296 = vector.broadcast %277 : vector<1x32xf32> to vector<16x32xf32>
      %297 = arith.addf %295, %296 : vector<16x32xf32>
      %c0_158 = arith.constant 0 : index
      %c0_159 = arith.constant 0 : index
      %c0_160 = arith.constant 0 : index
      %298 = vector.load %arg29[%c0_158, %c0_159, %c0_160] : memref<2x16x32xf32, #tpu.memory_space<vmem>>, vector<1x16x32xf32>
      %299 = vector.shape_cast %298 : vector<1x16x32xf32> to vector<16x32xf32>
      %300 = vector.shape_cast %297 : vector<16x32xf32> to vector<1x16x32xf32>
      tpu.vector_store %arg29[%c0_158, %c0_159, %c0_160], %300 {strides = array<i32>} : memref<2x16x32xf32, #tpu.memory_space<vmem>>, vector<1x16x32xf32>,
    } else {
    }
    %c4_i32 = arith.constant 4 : i32
    %3 = arith.cmpi sge, %arg0, %c4_i32 : i32
    %4 = arith.extui %3 : i1 to i32
    %5 = arith.index_cast %4 : i32 to index
    %c0 = arith.constant 0 : index
    %c0_1 = arith.constant 0 : index
    %6 = vector.load %arg29[%5, %c0, %c0_1] : memref<2x16x32xf32, #tpu.memory_space<vmem>>, vector<1x16x32xf32>
    %7 = vector.shape_cast %6 : vector<1x16x32xf32> to vector<16x32xf32>
    %cst = arith.constant 0.000000e+00 : f32
    %8 = vector.broadcast %cst : f32 to vector<16x32xf32>
    %c0_2 = arith.constant 0 : index
    %c0_3 = arith.constant 0 : index
    %c0_4 = arith.constant 0 : index
    %c0_5 = arith.constant 0 : index
    %9 = vector.load %arg6[%c0_2, %c0_3, %c0_4, %c0_5] : memref<1x2x32x16xf32, #tpu.memory_space<vmem>>, vector<1x1x32x16xf32>
    %10 = vector.shape_cast %9 : vector<1x1x32x16xf32> to vector<32x16xf32>
    %11 = arith.truncf %7 : vector<16x32xf32> to vector<16x32xbf16>
    %12 = arith.truncf %10 : vector<32x16xf32> to vector<32x16xbf16>
    %cst_6 = arith.constant dense<0.000000e+00> : vector<16x16xf32>
    %13 = tpu.matmul %11, %12, %cst_6 {dimension_numbers = #tpu.dot_dimension_numbers<[1], [0], [0], [1], [0, 0, 1, 1], [], []>} : vector<16x32xbf16>, vector<32x16xbf16>, vector<16x16xf32> -> vector<16x16xf32>
    %c0_7 = arith.constant 0 : index
    %c0_8 = arith.constant 0 : index
    %c0_9 = arith.constant 0 : index
    %c0_10 = arith.constant 0 : index
    %14 = vector.load %arg9[%c0_7, %c0_8, %c0_9, %c0_10] : memref<1x2x1x16xf32, #tpu.memory_space<vmem>>, vector<1x1x1x16xf32>
    %15 = vector.shape_cast %14 : vector<1x1x1x16xf32> to vector<1x16xf32>
    %16 = vector.broadcast %15 : vector<1x16xf32> to vector<16x16xf32>
    %17 = arith.addf %13, %16 : vector<16x16xf32>
    %c0_11 = arith.constant 0 : index
    %c0_12 = arith.constant 0 : index
    %c0_13 = arith.constant 0 : index
    %c0_14 = arith.constant 0 : index
    %18 = vector.load %arg7[%c0_11, %c0_12, %c0_13, %c0_14] : memref<1x2x32x16xf32, #tpu.memory_space<vmem>>, vector<1x1x32x16xf32>
    %19 = vector.shape_cast %18 : vector<1x1x32x16xf32> to vector<32x16xf32>
    %20 = arith.truncf %7 : vector<16x32xf32> to vector<16x32xbf16>
    %21 = arith.truncf %19 : vector<32x16xf32> to vector<32x16xbf16>
    %cst_15 = arith.constant dense<0.000000e+00> : vector<16x16xf32>
    %22 = tpu.matmul %20, %21, %cst_15 {dimension_numbers = #tpu.dot_dimension_numbers<[1], [0], [0], [1], [0, 0, 1, 1], [], []>} : vector<16x32xbf16>, vector<32x16xbf16>, vector<16x16xf32> -> vector<16x16xf32>
    %c0_16 = arith.constant 0 : index
    %c0_17 = arith.constant 0 : index
    %c0_18 = arith.constant 0 : index
    %c0_19 = arith.constant 0 : index
    %23 = vector.load %arg10[%c0_16, %c0_17, %c0_18, %c0_19] : memref<1x2x1x16xf32, #tpu.memory_space<vmem>>, vector<1x1x1x16xf32>
    %24 = vector.shape_cast %23 : vector<1x1x1x16xf32> to vector<1x16xf32>
    %25 = vector.broadcast %24 : vector<1x16xf32> to vector<16x16xf32>
    %26 = arith.addf %22, %25 : vector<16x16xf32>
    %c0_20 = arith.constant 0 : index
    %c0_21 = arith.constant 0 : index
    %c0_22 = arith.constant 0 : index
    %c0_23 = arith.constant 0 : index
    %27 = vector.load %arg8[%c0_20, %c0_21, %c0_22, %c0_23] : memref<1x2x32x16xf32, #tpu.memory_space<vmem>>, vector<1x1x32x16xf32>
    %28 = vector.shape_cast %27 : vector<1x1x32x16xf32> to vector<32x16xf32>
    %29 = arith.truncf %7 : vector<16x32xf32> to vector<16x32xbf16>
    %30 = arith.truncf %28 : vector<32x16xf32> to vector<32x16xbf16>
    %cst_24 = arith.constant dense<0.000000e+00> : vector<16x16xf32>
    %31 = tpu.matmul %29, %30, %cst_24 {dimension_numbers = #tpu.dot_dimension_numbers<[1], [0], [0], [1], [0, 0, 1, 1], [], []>} : vector<16x32xbf16>, vector<32x16xbf16>, vector<16x16xf32> -> vector<16x16xf32>
    %c0_25 = arith.constant 0 : index
    %c0_26 = arith.constant 0 : index
    %c0_27 = arith.constant 0 : index
    %c0_28 = arith.constant 0 : index
    %32 = vector.load %arg11[%c0_25, %c0_26, %c0_27, %c0_28] : memref<1x2x1x16xf32, #tpu.memory_space<vmem>>, vector<1x1x1x16xf32>
    %33 = vector.shape_cast %32 : vector<1x1x1x16xf32> to vector<1x16xf32>
    %34 = vector.broadcast %33 : vector<1x16xf32> to vector<16x16xf32>
    %35 = arith.addf %31, %34 : vector<16x16xf32>
    %36 = vector.extract_strided_slice %17 {offsets = [0, 0], sizes = [8, 16], strides = [1, 1]} : vector<16x16xf32> to vector<8x16xf32>
    %37 = vector.extract_strided_slice %26 {offsets = [0, 0], sizes = [8, 16], strides = [1, 1]} : vector<16x16xf32> to vector<8x16xf32>
    %38 = vector.extract_strided_slice %35 {offsets = [0, 0], sizes = [8, 16], strides = [1, 1]} : vector<16x16xf32> to vector<8x16xf32>
    %39 = arith.truncf %36 : vector<8x16xf32> to vector<8x16xbf16>
    %40 = arith.truncf %37 : vector<8x16xf32> to vector<8x16xbf16>
    %cst_29 = arith.constant dense<0.000000e+00> : vector<8x8xf32>
    %41 = tpu.matmul %39, %40, %cst_29 {dimension_numbers = #tpu.dot_dimension_numbers<[1], [1], [0], [0], [0, 0, 1, 0], [], []>} : vector<8x16xbf16>, vector<8x16xbf16>, vector<8x8xf32> -> vector<8x8xf32>
    %cst_30 = arith.constant 2.500000e-01 : f32
    %42 = vector.broadcast %cst_30 : f32 to vector<8x8xf32>
    %43 = arith.mulf %41, %42 : vector<8x8xf32>
    %c0_31 = arith.constant 0 : index
    %c0_32 = arith.constant 0 : index
    %c0_33 = arith.constant 0 : index
    %44 = vector.load %arg3[%c0_31, %c0_32, %c0_33] : memref<2x1x8xf32, #tpu.memory_space<vmem>>, vector<1x1x8xf32>
    %45 = vector.shape_cast %44 : vector<1x1x8xf32> to vector<1x8xf32>
    %46 = vector.broadcast %45 : vector<1x8xf32> to vector<8x8xf32>
    %47 = arith.addf %43, %46 : vector<8x8xf32>
    %cst_34 = arith.constant dense<0xFF800000> : vector<8xf32>
    %48 = vector.multi_reduction <maximumf>, %47, %cst_34 [1] : vector<8x8xf32> to vector<8xf32>
    %49 = vector.shape_cast %48 : vector<8xf32> to vector<8x1xf32>
    %50 = vector.broadcast %49 : vector<8x1xf32> to vector<8x8xf32>
    %51 = arith.subf %47, %50 : vector<8x8xf32>
    %52 = math.exp %51 : vector<8x8xf32>
    %cst_35 = arith.constant dense<0.000000e+00> : vector<8xf32>
    %53 = vector.multi_reduction <add>, %52, %cst_35 [1] : vector<8x8xf32> to vector<8xf32>
    %54 = vector.shape_cast %53 : vector<8xf32> to vector<8x1xf32>
    %55 = tpu.reciprocal %54 {approx = true} : vector<8x1xf32> -> vector<8x1xf32>
    %56 = vector.broadcast %55 : vector<8x1xf32> to vector<8x8xf32>
    %57 = arith.mulf %52, %56 : vector<8x8xf32>
    %58 = arith.truncf %57 : vector<8x8xf32> to vector<8x8xbf16>
    %59 = arith.truncf %38 : vector<8x16xf32> to vector<8x16xbf16>
    %cst_36 = arith.constant dense<0.000000e+00> : vector<8x16xf32>
    %60 = tpu.matmul %58, %59, %cst_36 {dimension_numbers = #tpu.dot_dimension_numbers<[1], [0], [0], [1], [0, 0, 1, 1], [], []>} : vector<8x8xbf16>, vector<8x16xbf16>, vector<8x16xf32> -> vector<8x16xf32>
    %61 = vector.extract_strided_slice %17 {offsets = [8, 0], sizes = [8, 16], strides = [1, 1]} : vector<16x16xf32> to vector<8x16xf32>
    %62 = vector.extract_strided_slice %26 {offsets = [8, 0], sizes = [8, 16], strides = [1, 1]} : vector<16x16xf32> to vector<8x16xf32>
    %63 = vector.extract_strided_slice %35 {offsets = [8, 0], sizes = [8, 16], strides = [1, 1]} : vector<16x16xf32> to vector<8x16xf32>
    %64 = arith.truncf %61 : vector<8x16xf32> to vector<8x16xbf16>
    %65 = arith.truncf %62 : vector<8x16xf32> to vector<8x16xbf16>
    %cst_37 = arith.constant dense<0.000000e+00> : vector<8x8xf32>
    %66 = tpu.matmul %64, %65, %cst_37 {dimension_numbers = #tpu.dot_dimension_numbers<[1], [1], [0], [0], [0, 0, 1, 0], [], []>} : vector<8x16xbf16>, vector<8x16xbf16>, vector<8x8xf32> -> vector<8x8xf32>
    %cst_38 = arith.constant 2.500000e-01 : f32
    %67 = vector.broadcast %cst_38 : f32 to vector<8x8xf32>
    %68 = arith.mulf %66, %67 : vector<8x8xf32>
    %c1 = arith.constant 1 : index
    %c0_39 = arith.constant 0 : index
    %c0_40 = arith.constant 0 : index
    %69 = vector.load %arg3[%c1, %c0_39, %c0_40] : memref<2x1x8xf32, #tpu.memory_space<vmem>>, vector<1x1x8xf32>
    %70 = vector.shape_cast %69 : vector<1x1x8xf32> to vector<1x8xf32>
    %71 = vector.broadcast %70 : vector<1x8xf32> to vector<8x8xf32>
    %72 = arith.addf %68, %71 : vector<8x8xf32>
    %cst_41 = arith.constant dense<0xFF800000> : vector<8xf32>
    %73 = vector.multi_reduction <maximumf>, %72, %cst_41 [1] : vector<8x8xf32> to vector<8xf32>
    %74 = vector.shape_cast %73 : vector<8xf32> to vector<8x1xf32>
    %75 = vector.broadcast %74 : vector<8x1xf32> to vector<8x8xf32>
    %76 = arith.subf %72, %75 : vector<8x8xf32>
    %77 = math.exp %76 : vector<8x8xf32>
    %cst_42 = arith.constant dense<0.000000e+00> : vector<8xf32>
    %78 = vector.multi_reduction <add>, %77, %cst_42 [1] : vector<8x8xf32> to vector<8xf32>
    %79 = vector.shape_cast %78 : vector<8xf32> to vector<8x1xf32>
    %80 = tpu.reciprocal %79 {approx = true} : vector<8x1xf32> -> vector<8x1xf32>
    %81 = vector.broadcast %80 : vector<8x1xf32> to vector<8x8xf32>
    %82 = arith.mulf %77, %81 : vector<8x8xf32>
    %83 = arith.truncf %82 : vector<8x8xf32> to vector<8x8xbf16>
    %84 = arith.truncf %63 : vector<8x16xf32> to vector<8x16xbf16>
    %cst_43 = arith.constant dense<0.000000e+00> : vector<8x16xf32>
    %85 = tpu.matmul %83, %84, %cst_43 {dimension_numbers = #tpu.dot_dimension_numbers<[1], [0], [0], [1], [0, 0, 1, 1], [], []>} : vector<8x8xbf16>, vector<8x16xbf16>, vector<8x16xf32> -> vector<8x16xf32>
    %86 = tpu.concatenate %60, %85 in 0 : vector<8x16xf32>, vector<8x16xf32> -> vector<16x16xf32>
    %c0_44 = arith.constant 0 : index
    %c0_45 = arith.constant 0 : index
    %c0_46 = arith.constant 0 : index
    %c0_47 = arith.constant 0 : index
    %87 = vector.load %arg12[%c0_44, %c0_45, %c0_46, %c0_47] : memref<1x2x16x32xf32, #tpu.memory_space<vmem>>, vector<1x1x16x32xf32>
    %88 = vector.shape_cast %87 : vector<1x1x16x32xf32> to vector<16x32xf32>
    %89 = arith.truncf %86 : vector<16x16xf32> to vector<16x16xbf16>
    %90 = arith.truncf %88 : vector<16x32xf32> to vector<16x32xbf16>
    %cst_48 = arith.constant dense<0.000000e+00> : vector<16x32xf32>
    %91 = tpu.matmul %89, %90, %cst_48 {dimension_numbers = #tpu.dot_dimension_numbers<[1], [0], [0], [1], [0, 0, 1, 1], [], []>} : vector<16x16xbf16>, vector<16x32xbf16>, vector<16x32xf32> -> vector<16x32xf32>
    %92 = arith.addf %8, %91 : vector<16x32xf32>
    %c0_49 = arith.constant 0 : index
    %c1_50 = arith.constant 1 : index
    %c0_51 = arith.constant 0 : index
    %c0_52 = arith.constant 0 : index
    %93 = vector.load %arg6[%c0_49, %c1_50, %c0_51, %c0_52] : memref<1x2x32x16xf32, #tpu.memory_space<vmem>>, vector<1x1x32x16xf32>
    %94 = vector.shape_cast %93 : vector<1x1x32x16xf32> to vector<32x16xf32>
    %95 = arith.truncf %7 : vector<16x32xf32> to vector<16x32xbf16>
    %96 = arith.truncf %94 : vector<32x16xf32> to vector<32x16xbf16>
    %cst_53 = arith.constant dense<0.000000e+00> : vector<16x16xf32>
    %97 = tpu.matmul %95, %96, %cst_53 {dimension_numbers = #tpu.dot_dimension_numbers<[1], [0], [0], [1], [0, 0, 1, 1], [], []>} : vector<16x32xbf16>, vector<32x16xbf16>, vector<16x16xf32> -> vector<16x16xf32>
    %c0_54 = arith.constant 0 : index
    %c1_55 = arith.constant 1 : index
    %c0_56 = arith.constant 0 : index
    %c0_57 = arith.constant 0 : index
    %98 = vector.load %arg9[%c0_54, %c1_55, %c0_56, %c0_57] : memref<1x2x1x16xf32, #tpu.memory_space<vmem>>, vector<1x1x1x16xf32>
    %99 = vector.shape_cast %98 : vector<1x1x1x16xf32> to vector<1x16xf32>
    %100 = vector.broadcast %99 : vector<1x16xf32> to vector<16x16xf32>
    %101 = arith.addf %97, %100 : vector<16x16xf32>
    %c0_58 = arith.constant 0 : index
    %c1_59 = arith.constant 1 : index
    %c0_60 = arith.constant 0 : index
    %c0_61 = arith.constant 0 : index
    %102 = vector.load %arg7[%c0_58, %c1_59, %c0_60, %c0_61] : memref<1x2x32x16xf32, #tpu.memory_space<vmem>>, vector<1x1x32x16xf32>
    %103 = vector.shape_cast %102 : vector<1x1x32x16xf32> to vector<32x16xf32>
    %104 = arith.truncf %7 : vector<16x32xf32> to vector<16x32xbf16>
    %105 = arith.truncf %103 : vector<32x16xf32> to vector<32x16xbf16>
    %cst_62 = arith.constant dense<0.000000e+00> : vector<16x16xf32>
    %106 = tpu.matmul %104, %105, %cst_62 {dimension_numbers = #tpu.dot_dimension_numbers<[1], [0], [0], [1], [0, 0, 1, 1], [], []>} : vector<16x32xbf16>, vector<32x16xbf16>, vector<16x16xf32> -> vector<16x16xf32>
    %c0_63 = arith.constant 0 : index
    %c1_64 = arith.constant 1 : index
    %c0_65 = arith.constant 0 : index
    %c0_66 = arith.constant 0 : index
    %107 = vector.load %arg10[%c0_63, %c1_64, %c0_65, %c0_66] : memref<1x2x1x16xf32, #tpu.memory_space<vmem>>, vector<1x1x1x16xf32>
    %108 = vector.shape_cast %107 : vector<1x1x1x16xf32> to vector<1x16xf32>
    %109 = vector.broadcast %108 : vector<1x16xf32> to vector<16x16xf32>
    %110 = arith.addf %106, %109 : vector<16x16xf32>
    %c0_67 = arith.constant 0 : index
    %c1_68 = arith.constant 1 : index
    %c0_69 = arith.constant 0 : index
    %c0_70 = arith.constant 0 : index
    %111 = vector.load %arg8[%c0_67, %c1_68, %c0_69, %c0_70] : memref<1x2x32x16xf32, #tpu.memory_space<vmem>>, vector<1x1x32x16xf32>
    %112 = vector.shape_cast %111 : vector<1x1x32x16xf32> to vector<32x16xf32>
    %113 = arith.truncf %7 : vector<16x32xf32> to vector<16x32xbf16>
    %114 = arith.truncf %112 : vector<32x16xf32> to vector<32x16xbf16>
    %cst_71 = arith.constant dense<0.000000e+00> : vector<16x16xf32>
    %115 = tpu.matmul %113, %114, %cst_71 {dimension_numbers = #tpu.dot_dimension_numbers<[1], [0], [0], [1], [0, 0, 1, 1], [], []>} : vector<16x32xbf16>, vector<32x16xbf16>, vector<16x16xf32> -> vector<16x16xf32>
    %c0_72 = arith.constant 0 : index
    %c1_73 = arith.constant 1 : index
    %c0_74 = arith.constant 0 : index
    %c0_75 = arith.constant 0 : index
    %116 = vector.load %arg11[%c0_72, %c1_73, %c0_74, %c0_75] : memref<1x2x1x16xf32, #tpu.memory_space<vmem>>, vector<1x1x1x16xf32>
    %117 = vector.shape_cast %116 : vector<1x1x1x16xf32> to vector<1x16xf32>
    %118 = vector.broadcast %117 : vector<1x16xf32> to vector<16x16xf32>
    %119 = arith.addf %115, %118 : vector<16x16xf32>
    %120 = vector.extract_strided_slice %101 {offsets = [0, 0], sizes = [8, 16], strides = [1, 1]} : vector<16x16xf32> to vector<8x16xf32>
    %121 = vector.extract_strided_slice %110 {offsets = [0, 0], sizes = [8, 16], strides = [1, 1]} : vector<16x16xf32> to vector<8x16xf32>
    %122 = vector.extract_strided_slice %119 {offsets = [0, 0], sizes = [8, 16], strides = [1, 1]} : vector<16x16xf32> to vector<8x16xf32>
    %123 = arith.truncf %120 : vector<8x16xf32> to vector<8x16xbf16>
    %124 = arith.truncf %121 : vector<8x16xf32> to vector<8x16xbf16>
    %cst_76 = arith.constant dense<0.000000e+00> : vector<8x8xf32>
    %125 = tpu.matmul %123, %124, %cst_76 {dimension_numbers = #tpu.dot_dimension_numbers<[1], [1], [0], [0], [0, 0, 1, 0], [], []>} : vector<8x16xbf16>, vector<8x16xbf16>, vector<8x8xf32> -> vector<8x8xf32>
    %cst_77 = arith.constant 2.500000e-01 : f32
    %126 = vector.broadcast %cst_77 : f32 to vector<8x8xf32>
    %127 = arith.mulf %125, %126 : vector<8x8xf32>
    %c0_78 = arith.constant 0 : index
    %c0_79 = arith.constant 0 : index
    %c0_80 = arith.constant 0 : index
    %128 = vector.load %arg3[%c0_78, %c0_79, %c0_80] : memref<2x1x8xf32, #tpu.memory_space<vmem>>, vector<1x1x8xf32>
    %129 = vector.shape_cast %128 : vector<1x1x8xf32> to vector<1x8xf32>
    %130 = vector.broadcast %129 : vector<1x8xf32> to vector<8x8xf32>
    %131 = arith.addf %127, %130 : vector<8x8xf32>
    %cst_81 = arith.constant dense<0xFF800000> : vector<8xf32>
    %132 = vector.multi_reduction <maximumf>, %131, %cst_81 [1] : vector<8x8xf32> to vector<8xf32>
    %133 = vector.shape_cast %132 : vector<8xf32> to vector<8x1xf32>
    %134 = vector.broadcast %133 : vector<8x1xf32> to vector<8x8xf32>
    %135 = arith.subf %131, %134 : vector<8x8xf32>
    %136 = math.exp %135 : vector<8x8xf32>
    %cst_82 = arith.constant dense<0.000000e+00> : vector<8xf32>
    %137 = vector.multi_reduction <add>, %136, %cst_82 [1] : vector<8x8xf32> to vector<8xf32>
    %138 = vector.shape_cast %137 : vector<8xf32> to vector<8x1xf32>
    %139 = tpu.reciprocal %138 {approx = true} : vector<8x1xf32> -> vector<8x1xf32>
    %140 = vector.broadcast %139 : vector<8x1xf32> to vector<8x8xf32>
    %141 = arith.mulf %136, %140 : vector<8x8xf32>
    %142 = arith.truncf %141 : vector<8x8xf32> to vector<8x8xbf16>
    %143 = arith.truncf %122 : vector<8x16xf32> to vector<8x16xbf16>
    %cst_83 = arith.constant dense<0.000000e+00> : vector<8x16xf32>
    %144 = tpu.matmul %142, %143, %cst_83 {dimension_numbers = #tpu.dot_dimension_numbers<[1], [0], [0], [1], [0, 0, 1, 1], [], []>} : vector<8x8xbf16>, vector<8x16xbf16>, vector<8x16xf32> -> vector<8x16xf32>
    %145 = vector.extract_strided_slice %101 {offsets = [8, 0], sizes = [8, 16], strides = [1, 1]} : vector<16x16xf32> to vector<8x16xf32>
    %146 = vector.extract_strided_slice %110 {offsets = [8, 0], sizes = [8, 16], strides = [1, 1]} : vector<16x16xf32> to vector<8x16xf32>
    %147 = vector.extract_strided_slice %119 {offsets = [8, 0], sizes = [8, 16], strides = [1, 1]} : vector<16x16xf32> to vector<8x16xf32>
    %148 = arith.truncf %145 : vector<8x16xf32> to vector<8x16xbf16>
    %149 = arith.truncf %146 : vector<8x16xf32> to vector<8x16xbf16>
    %cst_84 = arith.constant dense<0.000000e+00> : vector<8x8xf32>
    %150 = tpu.matmul %148, %149, %cst_84 {dimension_numbers = #tpu.dot_dimension_numbers<[1], [1], [0], [0], [0, 0, 1, 0], [], []>} : vector<8x16xbf16>, vector<8x16xbf16>, vector<8x8xf32> -> vector<8x8xf32>
    %cst_85 = arith.constant 2.500000e-01 : f32
    %151 = vector.broadcast %cst_85 : f32 to vector<8x8xf32>
    %152 = arith.mulf %150, %151 : vector<8x8xf32>
    %c1_86 = arith.constant 1 : index
    %c0_87 = arith.constant 0 : index
    %c0_88 = arith.constant 0 : index
    %153 = vector.load %arg3[%c1_86, %c0_87, %c0_88] : memref<2x1x8xf32, #tpu.memory_space<vmem>>, vector<1x1x8xf32>
    %154 = vector.shape_cast %153 : vector<1x1x8xf32> to vector<1x8xf32>
    %155 = vector.broadcast %154 : vector<1x8xf32> to vector<8x8xf32>
    %156 = arith.addf %152, %155 : vector<8x8xf32>
    %cst_89 = arith.constant dense<0xFF800000> : vector<8xf32>
    %157 = vector.multi_reduction <maximumf>, %156, %cst_89 [1] : vector<8x8xf32> to vector<8xf32>
    %158 = vector.shape_cast %157 : vector<8xf32> to vector<8x1xf32>
    %159 = vector.broadcast %158 : vector<8x1xf32> to vector<8x8xf32>
    %160 = arith.subf %156, %159 : vector<8x8xf32>
    %161 = math.exp %160 : vector<8x8xf32>
    %cst_90 = arith.constant dense<0.000000e+00> : vector<8xf32>
    %162 = vector.multi_reduction <add>, %161, %cst_90 [1] : vector<8x8xf32> to vector<8xf32>
    %163 = vector.shape_cast %162 : vector<8xf32> to vector<8x1xf32>
    %164 = tpu.reciprocal %163 {approx = true} : vector<8x1xf32> -> vector<8x1xf32>
    %165 = vector.broadcast %164 : vector<8x1xf32> to vector<8x8xf32>
    %166 = arith.mulf %161, %165 : vector<8x8xf32>
    %167 = arith.truncf %166 : vector<8x8xf32> to vector<8x8xbf16>
    %168 = arith.truncf %147 : vector<8x16xf32> to vector<8x16xbf16>
    %cst_91 = arith.constant dense<0.000000e+00> : vector<8x16xf32>
    %169 = tpu.matmul %167, %168, %cst_91 {dimension_numbers = #tpu.dot_dimension_numbers<[1], [0], [0], [1], [0, 0, 1, 1], [], []>} : vector<8x8xbf16>, vector<8x16xbf16>, vector<8x16xf32> -> vector<8x16xf32>
    %170 = tpu.concatenate %144, %169 in 0 : vector<8x16xf32>, vector<8x16xf32> -> vector<16x16xf32>
    %c0_92 = arith.constant 0 : index
    %c1_93 = arith.constant 1 : index
    %c0_94 = arith.constant 0 : index
    %c0_95 = arith.constant 0 : index
    %171 = vector.load %arg12[%c0_92, %c1_93, %c0_94, %c0_95] : memref<1x2x16x32xf32, #tpu.memory_space<vmem>>, vector<1x1x16x32xf32>
    %172 = vector.shape_cast %171 : vector<1x1x16x32xf32> to vector<16x32xf32>
    %173 = arith.truncf %170 : vector<16x16xf32> to vector<16x16xbf16>
    %174 = arith.truncf %172 : vector<16x32xf32> to vector<16x32xbf16>
    %cst_96 = arith.constant dense<0.000000e+00> : vector<16x32xf32>
    %175 = tpu.matmul %173, %174, %cst_96 {dimension_numbers = #tpu.dot_dimension_numbers<[1], [0], [0], [1], [0, 0, 1, 1], [], []>} : vector<16x16xbf16>, vector<16x32xbf16>, vector<16x32xf32> -> vector<16x32xf32>
    %176 = arith.addf %92, %175 : vector<16x32xf32>
    %c0_97 = arith.constant 0 : index
    %c0_98 = arith.constant 0 : index
    %c0_99 = arith.constant 0 : index
    %177 = vector.load %arg13[%c0_97, %c0_98, %c0_99] : memref<1x1x32xf32, #tpu.memory_space<vmem>>, vector<1x1x32xf32>
    %178 = vector.shape_cast %177 : vector<1x1x32xf32> to vector<1x32xf32>
    %179 = vector.broadcast %178 : vector<1x32xf32> to vector<16x32xf32>
    %180 = arith.addf %176, %179 : vector<16x32xf32>
    %181 = arith.addf %180, %7 : vector<16x32xf32>
    %c0_100 = arith.constant 0 : index
    %c0_101 = arith.constant 0 : index
    %c0_102 = arith.constant 0 : index
    %182 = vector.load %arg14[%c0_100, %c0_101, %c0_102] : memref<1x1x32xf32, #tpu.memory_space<vmem>>, vector<1x1x32xf32>
    %183 = vector.shape_cast %182 : vector<1x1x32xf32> to vector<1x32xf32>
    %c0_103 = arith.constant 0 : index
    %c0_104 = arith.constant 0 : index
    %c0_105 = arith.constant 0 : index
    %184 = vector.load %arg15[%c0_103, %c0_104, %c0_105] : memref<1x1x32xf32, #tpu.memory_space<vmem>>, vector<1x1x32xf32>
    %185 = vector.shape_cast %184 : vector<1x1x32xf32> to vector<1x32xf32>
    %cst_106 = arith.constant dense<0.000000e+00> : vector<16xf32>
    %186 = vector.multi_reduction <add>, %181, %cst_106 [1] : vector<16x32xf32> to vector<16xf32>
    %187 = vector.shape_cast %186 : vector<16xf32> to vector<16x1xf32>
    %cst_107 = arith.constant 3.200000e+01 : f32
    %188 = vector.broadcast %cst_107 : f32 to vector<16x1xf32>
    %189 = arith.divf %187, %188 : vector<16x1xf32>
    %190 = vector.broadcast %189 : vector<16x1xf32> to vector<16x32xf32>
    %191 = arith.subf %181, %190 : vector<16x32xf32>
    %192 = arith.mulf %191, %191 : vector<16x32xf32>
    %cst_108 = arith.constant dense<0.000000e+00> : vector<16xf32>
    %193 = vector.multi_reduction <add>, %192, %cst_108 [1] : vector<16x32xf32> to vector<16xf32>
    %194 = vector.shape_cast %193 : vector<16xf32> to vector<16x1xf32>
    %cst_109 = arith.constant 3.200000e+01 : f32
    %195 = vector.broadcast %cst_109 : f32 to vector<16x1xf32>
    %196 = arith.divf %194, %195 : vector<16x1xf32>
    %cst_110 = arith.constant 9.99999974E-6 : f32
    %197 = vector.broadcast %cst_110 : f32 to vector<16x1xf32>
    %198 = arith.addf %196, %197 : vector<16x1xf32>
    %199 = math.rsqrt %198 : vector<16x1xf32>
    %200 = vector.broadcast %199 : vector<16x1xf32> to vector<16x32xf32>
    %201 = arith.mulf %191, %200 : vector<16x32xf32>
    %202 = vector.broadcast %183 : vector<1x32xf32> to vector<16x32xf32>
    %203 = arith.mulf %201, %202 : vector<16x32xf32>
    %204 = vector.broadcast %185 : vector<1x32xf32> to vector<16x32xf32>
    %205 = arith.addf %203, %204 : vector<16x32xf32>
    %c0_111 = arith.constant 0 : index
    %c0_112 = arith.constant 0 : index
    %c0_113 = arith.constant 0 : index
    %206 = vector.load %arg16[%c0_111, %c0_112, %c0_113] : memref<1x32x64xf32, #tpu.memory_space<vmem>>, vector<1x32x64xf32>
    %207 = vector.shape_cast %206 : vector<1x32x64xf32> to vector<32x64xf32>
    %208 = arith.truncf %205 : vector<16x32xf32> to vector<16x32xbf16>
    %209 = arith.truncf %207 : vector<32x64xf32> to vector<32x64xbf16>
    %cst_114 = arith.constant dense<0.000000e+00> : vector<16x64xf32>
    %210 = tpu.matmul %208, %209, %cst_114 {dimension_numbers = #tpu.dot_dimension_numbers<[1], [0], [0], [1], [0, 0, 1, 1], [], []>} : vector<16x32xbf16>, vector<32x64xbf16>, vector<16x64xf32> -> vector<16x64xf32>
    %c0_115 = arith.constant 0 : index
    %c0_116 = arith.constant 0 : index
    %c0_117 = arith.constant 0 : index
    %211 = vector.load %arg17[%c0_115, %c0_116, %c0_117] : memref<1x1x64xf32, #tpu.memory_space<vmem>>, vector<1x1x64xf32>
    %212 = vector.shape_cast %211 : vector<1x1x64xf32> to vector<1x64xf32>
    %213 = vector.broadcast %212 : vector<1x64xf32> to vector<16x64xf32>
    %214 = arith.addf %210, %213 : vector<16x64xf32>
    %215 = arith.mulf %214, %214 : vector<16x64xf32>
    %216 = arith.mulf %214, %215 : vector<16x64xf32>
    %cst_118 = arith.constant 4.471500e-02 : f32
    %217 = vector.broadcast %cst_118 : f32 to vector<16x64xf32>
    %218 = arith.mulf %217, %216 : vector<16x64xf32>
    %219 = arith.addf %214, %218 : vector<16x64xf32>
    %cst_119 = arith.constant 0.797884583 : f32
    %220 = vector.broadcast %cst_119 : f32 to vector<16x64xf32>
    %221 = arith.mulf %220, %219 : vector<16x64xf32>
    %222 = math.tanh %221 : vector<16x64xf32>
    %cst_120 = arith.constant 1.000000e+00 : f32
    %223 = vector.broadcast %cst_120 : f32 to vector<16x64xf32>
    %224 = arith.addf %223, %222 : vector<16x64xf32>
    %cst_121 = arith.constant 5.000000e-01 : f32
    %225 = vector.broadcast %cst_121 : f32 to vector<16x64xf32>
    %226 = arith.mulf %225, %224 : vector<16x64xf32>
    %227 = arith.mulf %214, %226 : vector<16x64xf32>
    %c0_122 = arith.constant 0 : index
    %c0_123 = arith.constant 0 : index
    %c0_124 = arith.constant 0 : index
    %228 = vector.load %arg18[%c0_122, %c0_123, %c0_124] : memref<1x64x32xf32, #tpu.memory_space<vmem>>, vector<1x64x32xf32>
    %229 = vector.shape_cast %228 : vector<1x64x32xf32> to vector<64x32xf32>
    %230 = arith.truncf %227 : vector<16x64xf32> to vector<16x64xbf16>
    %231 = arith.truncf %229 : vector<64x32xf32> to vector<64x32xbf16>
    %cst_125 = arith.constant dense<0.000000e+00> : vector<16x32xf32>
    %232 = tpu.matmul %230, %231, %cst_125 {dimension_numbers = #tpu.dot_dimension_numbers<[1], [0], [0], [1], [0, 0, 1, 1], [], []>} : vector<16x64xbf16>, vector<64x32xbf16>, vector<16x32xf32> -> vector<16x32xf32>
    %c0_126 = arith.constant 0 : index
    %c0_127 = arith.constant 0 : index
    %c0_128 = arith.constant 0 : index
    %233 = vector.load %arg19[%c0_126, %c0_127, %c0_128] : memref<1x1x32xf32, #tpu.memory_space<vmem>>, vector<1x1x32xf32>
    %234 = vector.shape_cast %233 : vector<1x1x32xf32> to vector<1x32xf32>
    %235 = vector.broadcast %234 : vector<1x32xf32> to vector<16x32xf32>
    %236 = arith.addf %232, %235 : vector<16x32xf32>
    %237 = arith.addf %236, %205 : vector<16x32xf32>
    %c0_129 = arith.constant 0 : index
    %c0_130 = arith.constant 0 : index
    %c0_131 = arith.constant 0 : index
    %238 = vector.load %arg20[%c0_129, %c0_130, %c0_131] : memref<1x1x32xf32, #tpu.memory_space<vmem>>, vector<1x1x32xf32>
    %239 = vector.shape_cast %238 : vector<1x1x32xf32> to vector<1x32xf32>
    %c0_132 = arith.constant 0 : index
    %c0_133 = arith.constant 0 : index
    %c0_134 = arith.constant 0 : index
    %240 = vector.load %arg21[%c0_132, %c0_133, %c0_134] : memref<1x1x32xf32, #tpu.memory_space<vmem>>, vector<1x1x32xf32>
    %241 = vector.shape_cast %240 : vector<1x1x32xf32> to vector<1x32xf32>
    %cst_135 = arith.constant dense<0.000000e+00> : vector<16xf32>
    %242 = vector.multi_reduction <add>, %237, %cst_135 [1] : vector<16x32xf32> to vector<16xf32>
    %243 = vector.shape_cast %242 : vector<16xf32> to vector<16x1xf32>
    %cst_136 = arith.constant 3.200000e+01 : f32
    %244 = vector.broadcast %cst_136 : f32 to vector<16x1xf32>
    %245 = arith.divf %243, %244 : vector<16x1xf32>
    %246 = vector.broadcast %245 : vector<16x1xf32> to vector<16x32xf32>
    %247 = arith.subf %237, %246 : vector<16x32xf32>
    %248 = arith.mulf %247, %247 : vector<16x32xf32>
    %cst_137 = arith.constant dense<0.000000e+00> : vector<16xf32>
    %249 = vector.multi_reduction <add>, %248, %cst_137 [1] : vector<16x32xf32> to vector<16xf32>
    %250 = vector.shape_cast %249 : vector<16xf32> to vector<16x1xf32>
    %cst_138 = arith.constant 3.200000e+01 : f32
    %251 = vector.broadcast %cst_138 : f32 to vector<16x1xf32>
    %252 = arith.divf %250, %251 : vector<16x1xf32>
    %cst_139 = arith.constant 9.99999974E-6 : f32
    %253 = vector.broadcast %cst_139 : f32 to vector<16x1xf32>
    %254 = arith.addf %252, %253 : vector<16x1xf32>
    %255 = math.rsqrt %254 : vector<16x1xf32>
    %256 = vector.broadcast %255 : vector<16x1xf32> to vector<16x32xf32>
    %257 = arith.mulf %247, %256 : vector<16x32xf32>
    %258 = vector.broadcast %239 : vector<1x32xf32> to vector<16x32xf32>
    %259 = arith.mulf %257, %258 : vector<16x32xf32>
    %260 = vector.broadcast %241 : vector<1x32xf32> to vector<16x32xf32>
    %261 = arith.addf %259, %260 : vector<16x32xf32>
    %262 = arith.index_cast %4 : i32 to index
    %c0_140 = arith.constant 0 : index
    %c0_141 = arith.constant 0 : index
    %263 = vector.load %arg29[%262, %c0_140, %c0_141] : memref<2x16x32xf32, #tpu.memory_space<vmem>>, vector<1x16x32xf32>
    %264 = vector.shape_cast %263 : vector<1x16x32xf32> to vector<16x32xf32>
    %265 = vector.shape_cast %261 : vector<16x32xf32> to vector<1x16x32xf32>
    tpu.vector_store %arg29[%262, %c0_140, %c0_141], %265 {strides = array<i32>} : memref<2x16x32xf32, #tpu.memory_space<vmem>>, vector<1x16x32xf32>,
    %c0_i32_142 = arith.constant 0 : i32
    %266 = arith.cmpi eq, %arg0, %c0_i32_142 : i32
    %267 = arith.extui %266 : i1 to i32
    %c0_i32_143 = arith.constant 0 : i32
    %268 = arith.cmpi ne, %267, %c0_i32_143 : i32
    scf.if %268 {
      %c1_147 = arith.constant 1 : index
      %c0_148 = arith.constant 0 : index
      %c0_149 = arith.constant 0 : index
      %275 = vector.load %arg29[%c1_147, %c0_148, %c0_149] : memref<2x16x32xf32, #tpu.memory_space<vmem>>, vector<1x16x32xf32>
      %276 = vector.shape_cast %275 : vector<1x16x32xf32> to vector<16x32xf32>
      %277 = vector.shape_cast %261 : vector<16x32xf32> to vector<1x16x32xf32>
      tpu.vector_store %arg29[%c1_147, %c0_148, %c0_149], %277 {strides = array<i32>} : memref<2x16x32xf32, #tpu.memory_space<vmem>>, vector<1x16x32xf32>,
    } else {
    }
    %c3_i32 = arith.constant 3 : i32
    %269 = arith.cmpi eq, %arg0, %c3_i32 : i32
    %270 = arith.extui %269 : i1 to i32
    %c0_i32_144 = arith.constant 0 : i32
    %271 = arith.cmpi ne, %270, %c0_i32_144 : i32
    scf.if %271 {
      %275 = vector.extract_strided_slice %261 {offsets = [0, 0], sizes = [1, 32], strides = [1, 1]} : vector<16x32xf32> to vector<1x32xf32>
      %276 = vector.extract_strided_slice %261 {offsets = [8, 0], sizes = [1, 32], strides = [1, 1]} : vector<16x32xf32> to vector<1x32xf32>
      %277 = tpu.concatenate %275, %276 in 0 : vector<1x32xf32>, vector<1x32xf32> -> vector<2x32xf32>
      %c0_147 = arith.constant 0 : index
      %c0_148 = arith.constant 0 : index
      %278 = vector.load %arg26[%c0_147, %c0_148] : memref<2x32xf32, #tpu.memory_space<vmem>>, vector<2x32xf32>
      tpu.vector_store %arg26[%c0_147, %c0_148], %277 {strides = array<i32>} : memref<2x32xf32, #tpu.memory_space<vmem>>, vector<2x32xf32>,
      %c0_149 = arith.constant 0 : index
      %c0_150 = arith.constant 0 : index
      %279 = vector.load %arg22[%c0_149, %c0_150] : memref<32x32xf32, #tpu.memory_space<vmem>>, vector<32x32xf32>
      %280 = arith.truncf %277 : vector<2x32xf32> to vector<2x32xbf16>
      %281 = arith.truncf %279 : vector<32x32xf32> to vector<32x32xbf16>
      %cst_151 = arith.constant dense<0.000000e+00> : vector<2x32xf32>
      %282 = tpu.matmul %280, %281, %cst_151 {dimension_numbers = #tpu.dot_dimension_numbers<[1], [0], [0], [1], [0, 0, 1, 1], [], []>} : vector<2x32xbf16>, vector<32x32xbf16>, vector<2x32xf32> -> vector<2x32xf32>
      %c0_152 = arith.constant 0 : index
      %c0_153 = arith.constant 0 : index
      %283 = vector.load %arg23[%c0_152, %c0_153] : memref<1x32xf32, #tpu.memory_space<vmem>>, vector<1x32xf32>
      %284 = vector.broadcast %283 : vector<1x32xf32> to vector<2x32xf32>
      %285 = arith.addf %282, %284 : vector<2x32xf32>
      %286 = math.tanh %285 : vector<2x32xf32>
      %c0_154 = arith.constant 0 : index
      %c0_155 = arith.constant 0 : index
      %287 = vector.load %arg24[%c0_154, %c0_155] : memref<32x3xf32, #tpu.memory_space<vmem>>, vector<32x3xf32>
      %288 = arith.truncf %286 : vector<2x32xf32> to vector<2x32xbf16>
      %289 = arith.truncf %287 : vector<32x3xf32> to vector<32x3xbf16>
      %cst_156 = arith.constant dense<0.000000e+00> : vector<2x3xf32>
      %290 = tpu.matmul %288, %289, %cst_156 {dimension_numbers = #tpu.dot_dimension_numbers<[1], [0], [0], [1], [0, 0, 1, 1], [], []>} : vector<2x32xbf16>, vector<32x3xbf16>, vector<2x3xf32> -> vector<2x3xf32>
      %c0_157 = arith.constant 0 : index
      %c0_158 = arith.constant 0 : index
      %291 = vector.load %arg25[%c0_157, %c0_158] : memref<1x3xf32, #tpu.memory_space<vmem>>, vector<1x3xf32>
      %292 = vector.broadcast %291 : vector<1x3xf32> to vector<2x3xf32>
      %293 = arith.addf %290, %292 : vector<2x3xf32>
      %c0_159 = arith.constant 0 : index
      %c0_160 = arith.constant 0 : index
      %294 = vector.load %arg28[%c0_159, %c0_160] : memref<2x3xf32, #tpu.memory_space<vmem>>, vector<2x3xf32>
      tpu.vector_store %arg28[%c0_159, %c0_160], %293 {strides = array<i32>} : memref<2x3xf32, #tpu.memory_space<vmem>>, vector<2x3xf32>,
    } else {
    }
    %c4_i32_145 = arith.constant 4 : i32
    %272 = arith.cmpi eq, %arg0, %c4_i32_145 : i32
    %273 = arith.extui %272 : i1 to i32
    %c0_i32_146 = arith.constant 0 : i32
    %274 = arith.cmpi ne, %273, %c0_i32_146 : i32
    scf.if %274 {
      %275 = vector.extract_strided_slice %261 {offsets = [0, 0], sizes = [1, 32], strides = [1, 1]} : vector<16x32xf32> to vector<1x32xf32>
      %276 = vector.extract_strided_slice %261 {offsets = [8, 0], sizes = [1, 32], strides = [1, 1]} : vector<16x32xf32> to vector<1x32xf32>
      %277 = tpu.concatenate %275, %276 in 0 : vector<1x32xf32>, vector<1x32xf32> -> vector<2x32xf32>
      %c0_147 = arith.constant 0 : index
      %c0_148 = arith.constant 0 : index
      %278 = vector.load %arg27[%c0_147, %c0_148] : memref<2x32xf32, #tpu.memory_space<vmem>>, vector<2x32xf32>
      tpu.vector_store %arg27[%c0_147, %c0_148], %277 {strides = array<i32>} : memref<2x32xf32, #tpu.memory_space<vmem>>, vector<2x32xf32>,
    } else {
    }
    return
  }
  func.func @transform_0(%arg0: i32, %arg1: memref<5xi32, #tpu.memory_space<smem>>) -> (i32, i32) {
    %c0_i32 = arith.constant 0 : i32
    %c0_i32_0 = arith.constant 0 : i32
    %c0_i32_1 = arith.constant 0 : i32
    return %c0_i32, %c0_i32_0 : i32, i32
  }
  func.func @transform_1(%arg0: i32, %arg1: memref<5xi32, #tpu.memory_space<smem>>) -> (i32, i32, i32) {
    %c0_i32 = arith.constant 0 : i32
    %c0_i32_0 = arith.constant 0 : i32
    %c0_i32_1 = arith.constant 0 : i32
    %c0_i32_2 = arith.constant 0 : i32
    return %c0_i32, %c0_i32_0, %c0_i32_1 : i32, i32, i32
  }
  func.func @transform_2(%arg0: i32, %arg1: memref<5xi32, #tpu.memory_space<smem>>) -> (i32, i32) {
    %c0_i32 = arith.constant 0 : i32
    %c0_i32_0 = arith.constant 0 : i32
    %c0_i32_1 = arith.constant 0 : i32
    return %c0_i32, %c0_i32_0 : i32, i32
  }
  func.func @transform_3(%arg0: i32, %arg1: memref<5xi32, #tpu.memory_space<smem>>) -> (i32, i32) {
    %c0_i32 = arith.constant 0 : i32
    %c0_i32_0 = arith.constant 0 : i32
    %c0_i32_1 = arith.constant 0 : i32
    return %c0_i32, %c0_i32_0 : i32, i32
  }
  func.func @transform_4(%arg0: i32, %arg1: memref<5xi32, #tpu.memory_space<smem>>) -> (i32, i32, i32, i32) {
    %0 = arith.index_cast %arg0 : i32 to index
    %1 = memref.load %arg1[%0] : memref<5xi32, #tpu.memory_space<smem>>
    %c0_i32 = arith.constant 0 : i32
    %c0_i32_0 = arith.constant 0 : i32
    %c0_i32_1 = arith.constant 0 : i32
    %c0_i32_2 = arith.constant 0 : i32
    return %1, %c0_i32, %c0_i32_0, %c0_i32_1 : i32, i32, i32, i32
  }
  func.func @transform_5(%arg0: i32, %arg1: memref<5xi32, #tpu.memory_space<smem>>) -> (i32, i32, i32, i32) {
    %0 = arith.index_cast %arg0 : i32 to index
    %1 = memref.load %arg1[%0] : memref<5xi32, #tpu.memory_space<smem>>
    %c0_i32 = arith.constant 0 : i32
    %c0_i32_0 = arith.constant 0 : i32
    %c0_i32_1 = arith.constant 0 : i32
    %c0_i32_2 = arith.constant 0 : i32
    return %1, %c0_i32, %c0_i32_0, %c0_i32_1 : i32, i32, i32, i32
  }
  func.func @transform_6(%arg0: i32, %arg1: memref<5xi32, #tpu.memory_space<smem>>) -> (i32, i32, i32, i32) {
    %0 = arith.index_cast %arg0 : i32 to index
    %1 = memref.load %arg1[%0] : memref<5xi32, #tpu.memory_space<smem>>
    %c0_i32 = arith.constant 0 : i32
    %c0_i32_0 = arith.constant 0 : i32
    %c0_i32_1 = arith.constant 0 : i32
    %c0_i32_2 = arith.constant 0 : i32
    return %1, %c0_i32, %c0_i32_0, %c0_i32_1 : i32, i32, i32, i32
  }
  func.func @transform_7(%arg0: i32, %arg1: memref<5xi32, #tpu.memory_space<smem>>) -> (i32, i32, i32, i32) {
    %0 = arith.index_cast %arg0 : i32 to index
    %1 = memref.load %arg1[%0] : memref<5xi32, #tpu.memory_space<smem>>
    %c0_i32 = arith.constant 0 : i32
    %c0_i32_0 = arith.constant 0 : i32
    %c0_i32_1 = arith.constant 0 : i32
    %c0_i32_2 = arith.constant 0 : i32
    return %1, %c0_i32, %c0_i32_0, %c0_i32_1 : i32, i32, i32, i32
  }
  func.func @transform_8(%arg0: i32, %arg1: memref<5xi32, #tpu.memory_space<smem>>) -> (i32, i32, i32, i32) {
    %0 = arith.index_cast %arg0 : i32 to index
    %1 = memref.load %arg1[%0] : memref<5xi32, #tpu.memory_space<smem>>
    %c0_i32 = arith.constant 0 : i32
    %c0_i32_0 = arith.constant 0 : i32
    %c0_i32_1 = arith.constant 0 : i32
    %c0_i32_2 = arith.constant 0 : i32
    return %1, %c0_i32, %c0_i32_0, %c0_i32_1 : i32, i32, i32, i32
  }
  func.func @transform_9(%arg0: i32, %arg1: memref<5xi32, #tpu.memory_space<smem>>) -> (i32, i32, i32, i32) {
    %0 = arith.index_cast %arg0 : i32 to index
    %1 = memref.load %arg1[%0] : memref<5xi32, #tpu.memory_space<smem>>
    %c0_i32 = arith.constant 0 : i32
    %c0_i32_0 = arith.constant 0 : i32
    %c0_i32_1 = arith.constant 0 : i32
    %c0_i32_2 = arith.constant 0 : i32
    return %1, %c0_i32, %c0_i32_0, %c0_i32_1 : i32, i32, i32, i32
  }
  func.func @transform_10(%arg0: i32, %arg1: memref<5xi32, #tpu.memory_space<smem>>) -> (i32, i32, i32, i32) {
    %0 = arith.index_cast %arg0 : i32 to index
    %1 = memref.load %arg1[%0] : memref<5xi32, #tpu.memory_space<smem>>
    %c0_i32 = arith.constant 0 : i32
    %c0_i32_0 = arith.constant 0 : i32
    %c0_i32_1 = arith.constant 0 : i32
    %c0_i32_2 = arith.constant 0 : i32
    return %1, %c0_i32, %c0_i32_0, %c0_i32_1 : i32, i32, i32, i32
  }
  func.func @transform_11(%arg0: i32, %arg1: memref<5xi32, #tpu.memory_space<smem>>) -> (i32, i32, i32) {
    %0 = arith.index_cast %arg0 : i32 to index
    %1 = memref.load %arg1[%0] : memref<5xi32, #tpu.memory_space<smem>>
    %c0_i32 = arith.constant 0 : i32
    %c0_i32_0 = arith.constant 0 : i32
    %c0_i32_1 = arith.constant 0 : i32
    return %1, %c0_i32, %c0_i32_0 : i32, i32, i32
  }
  func.func @transform_12(%arg0: i32, %arg1: memref<5xi32, #tpu.memory_space<smem>>) -> (i32, i32, i32) {
    %0 = arith.index_cast %arg0 : i32 to index
    %1 = memref.load %arg1[%0] : memref<5xi32, #tpu.memory_space<smem>>
    %c0_i32 = arith.constant 0 : i32
    %c0_i32_0 = arith.constant 0 : i32
    %c0_i32_1 = arith.constant 0 : i32
    return %1, %c0_i32, %c0_i32_0 : i32, i32, i32
  }
  func.func @transform_13(%arg0: i32, %arg1: memref<5xi32, #tpu.memory_space<smem>>) -> (i32, i32, i32) {
    %0 = arith.index_cast %arg0 : i32 to index
    %1 = memref.load %arg1[%0] : memref<5xi32, #tpu.memory_space<smem>>
    %c0_i32 = arith.constant 0 : i32
    %c0_i32_0 = arith.constant 0 : i32
    %c0_i32_1 = arith.constant 0 : i32
    return %1, %c0_i32, %c0_i32_0 : i32, i32, i32
  }
  func.func @transform_14(%arg0: i32, %arg1: memref<5xi32, #tpu.memory_space<smem>>) -> (i32, i32, i32) {
    %0 = arith.index_cast %arg0 : i32 to index
    %1 = memref.load %arg1[%0] : memref<5xi32, #tpu.memory_space<smem>>
    %c0_i32 = arith.constant 0 : i32
    %c0_i32_0 = arith.constant 0 : i32
    %c0_i32_1 = arith.constant 0 : i32
    return %1, %c0_i32, %c0_i32_0 : i32, i32, i32
  }
  func.func @transform_15(%arg0: i32, %arg1: memref<5xi32, #tpu.memory_space<smem>>) -> (i32, i32, i32) {
    %0 = arith.index_cast %arg0 : i32 to index
    %1 = memref.load %arg1[%0] : memref<5xi32, #tpu.memory_space<smem>>
    %c0_i32 = arith.constant 0 : i32
    %c0_i32_0 = arith.constant 0 : i32
    %c0_i32_1 = arith.constant 0 : i32
    return %1, %c0_i32, %c0_i32_0 : i32, i32, i32
  }
  func.func @transform_16(%arg0: i32, %arg1: memref<5xi32, #tpu.memory_space<smem>>) -> (i32, i32, i32) {
    %0 = arith.index_cast %arg0 : i32 to index
    %1 = memref.load %arg1[%0] : memref<5xi32, #tpu.memory_space<smem>>
    %c0_i32 = arith.constant 0 : i32
    %c0_i32_0 = arith.constant 0 : i32
    %c0_i32_1 = arith.constant 0 : i32
    return %1, %c0_i32, %c0_i32_0 : i32, i32, i32
  }
  func.func @transform_17(%arg0: i32, %arg1: memref<5xi32, #tpu.memory_space<smem>>) -> (i32, i32, i32) {
    %0 = arith.index_cast %arg0 : i32 to index
    %1 = memref.load %arg1[%0] : memref<5xi32, #tpu.memory_space<smem>>
    %c0_i32 = arith.constant 0 : i32
    %c0_i32_0 = arith.constant 0 : i32
    %c0_i32_1 = arith.constant 0 : i32
    return %1, %c0_i32, %c0_i32_0 : i32, i32, i32
  }
  func.func @transform_18(%arg0: i32, %arg1: memref<5xi32, #tpu.memory_space<smem>>) -> (i32, i32, i32) {
    %0 = arith.index_cast %arg0 : i32 to index
    %1 = memref.load %arg1[%0] : memref<5xi32, #tpu.memory_space<smem>>
    %c0_i32 = arith.constant 0 : i32
    %c0_i32_0 = arith.constant 0 : i32
    %c0_i32_1 = arith.constant 0 : i32
    return %1, %c0_i32, %c0_i32_0 : i32, i32, i32
  }
  func.func @transform_19(%arg0: i32, %arg1: memref<5xi32, #tpu.memory_space<smem>>) -> (i32, i32, i32) {
    %0 = arith.index_cast %arg0 : i32 to index
    %1 = memref.load %arg1[%0] : memref<5xi32, #tpu.memory_space<smem>>
    %c0_i32 = arith.constant 0 : i32
    %c0_i32_0 = arith.constant 0 : i32
    %c0_i32_1 = arith.constant 0 : i32
    return %1, %c0_i32, %c0_i32_0 : i32, i32, i32
  }
  func.func @transform_20(%arg0: i32, %arg1: memref<5xi32, #tpu.memory_space<smem>>) -> (i32, i32) {
    %c0_i32 = arith.constant 0 : i32
    %c0_i32_0 = arith.constant 0 : i32
    %c0_i32_1 = arith.constant 0 : i32
    return %c0_i32, %c0_i32_0 : i32, i32
  }
  func.func @transform_21(%arg0: i32, %arg1: memref<5xi32, #tpu.memory_space<smem>>) -> (i32, i32) {
    %c0_i32 = arith.constant 0 : i32
    %c0_i32_0 = arith.constant 0 : i32
    %c0_i32_1 = arith.constant 0 : i32
    return %c0_i32, %c0_i32_0 : i32, i32
  }
  func.func @transform_22(%arg0: i32, %arg1: memref<5xi32, #tpu.memory_space<smem>>) -> (i32, i32) {
    %c0_i32 = arith.constant 0 : i32
    %c0_i32_0 = arith.constant 0 : i32
    %c0_i32_1 = arith.constant 0 : i32
    return %c0_i32, %c0_i32_0 : i32, i32
  }
  func.func @transform_23(%arg0: i32, %arg1: memref<5xi32, #tpu.memory_space<smem>>) -> (i32, i32) {
    %c0_i32 = arith.constant 0 : i32
    %c0_i32_0 = arith.constant 0 : i32
    %c0_i32_1 = arith.constant 0 : i32
    return %c0_i32, %c0_i32_0 : i32, i32
  }
  func.func @transform_24(%arg0: i32, %arg1: memref<5xi32, #tpu.memory_space<smem>>) -> (i32, i32) {
    %c0_i32 = arith.constant 0 : i32
    %c0_i32_0 = arith.constant 0 : i32
    %c0_i32_1 = arith.constant 0 : i32
    return %c0_i32, %c0_i32_0 : i32, i32
  }
  func.func @transform_25(%arg0: i32, %arg1: memref<5xi32, #tpu.memory_space<smem>>) -> (i32, i32) {
    %c0_i32 = arith.constant 0 : i32
    %c0_i32_0 = arith.constant 0 : i32
    %c0_i32_1 = arith.constant 0 : i32
    return %c0_i32, %c0_i32_0 : i32, i32
  }
  func.func @transform_26(%arg0: i32, %arg1: memref<5xi32, #tpu.memory_space<smem>>) -> (i32, i32) {
    %c0_i32 = arith.constant 0 : i32
    %c0_i32_0 = arith.constant 0 : i32
    %c0_i32_1 = arith.constant 0 : i32
    return %c0_i32, %c0_i32_0 : i32, i32
  }
}

</mosaic_0001>

<bundles_post_ra>
// kernel: distilled_forward.1
= control target key start
LH: loop header
LB: loop body
LE: loop exit
PB: predicated region body
PF: predicated region fallthrough
CT: control target
= control target key end

     0   :  { %s3610_s0 = inlined_call_operand.vmem [shape: s32[5], index: 0, kind: input, shape index: {}]   ;;  %s3611_s1 = inlined_call_operand.vmem [shape: f32[16,32], index: 1, kind: input, shape index: {}]   ;;  %s3612_s2 = inlined_call_operand.vmem [shape: f32[2,1,8], index: 2, kind: input, shape index: {}]   ;;  %s3613_s3 = inlined_call_operand.vmem [shape: f32[1,32], index: 3, kind: input, shape index: {}]   ;;  %s3614_s4 = inlined_call_operand.vmem [shape: f32[1,32], index: 4, kind: input, shape index: {}]   ;;  %s3615_s5 = inlined_call_operand.vmem [shape: f32[4,2,32,16], index: 5, kind: input, shape index: {}]   ;;  %s3616_s6 = inlined_call_operand.vmem [shape: f32[4,2,32,16], index: 6, kind: input, shape index: {}]   ;;  %s3617_s7 = inlined_call_operand.vmem [shape: f32[4,2,32,16], index: 7, kind: input, shape index: {}]   ;;  %s3618_s8 = inlined_call_operand.vmem [shape: f32[4,2,1,16], index: 8, kind: input, shape index: {}]   ;;  %s3619_s9 = inlined_call_operand.vmem [shape: f32[4,2,1,16], index: 9, kind: input, shape index: {}]   ;;  %s3620_s10 = inlined_call_operand.vmem [shape: f32[4,2,1,16], index: 10, kind: input, shape index: {}]   ;;  %s3621_s11 = inlined_call_operand.vmem [shape: f32[4,2,16,32], index: 11, kind: input, shape index: {}]   ;;  %s3622_s12 = inlined_call_operand.vmem [shape: f32[4,1,32], index: 12, kind: input, shape index: {}]   ;;  %s3623_s13 = inlined_call_operand.vmem [shape: f32[4,1,32], index: 13, kind: input, shape index: {}]   ;;  %s3624_s14 = inlined_call_operand.vmem [shape: f32[4,1,32], index: 14, kind: input, shape index: {}]   ;;  %s3625_s15 = inlined_call_operand.vmem [shape: f32[4,32,64], index: 15, kind: input, shape index: {}]   ;;  %s3626_s16 = inlined_call_operand.vmem [shape: f32[4,1,64], index: 16, kind: input, shape index: {}]   ;;  %s3627_s17 = inlined_call_operand.vmem [shape: f32[4,64,32], index: 17, kind: input, shape index: {}]   ;;  %s3628_s18 = inlined_call_operand.vmem [shape: f32[4,1,32], index: 18, kind: input, shape index: {}]   ;;  %s3629_s19 = inlined_call_operand.vmem [shape: f32[4,1,32], index: 19, kind: input, shape index: {}]   ;;  %s3630_s20 = inlined_call_operand.vmem [shape: f32[4,1,32], index: 20, kind: input, shape index: {}]   ;;  %s3631_s21 = inlined_call_operand.vmem [shape: f32[32,32], index: 21, kind: input, shape index: {}]   ;;  %s3632_s22 = inlined_call_operand.vmem [shape: f32[1,32], index: 22, kind: input, shape index: {}]   ;;  %s3633_s23 = inlined_call_operand.vmem [shape: f32[32,3], index: 23, kind: input, shape index: {}]   ;;  %s3634_s24 = inlined_call_operand.vmem [shape: f32[1,3], index: 24, kind: input, shape index: {}]   ;;  %s3635_s25 = inlined_call_operand.vmem [shape: f32[2,32], index: 25, kind: output, shape index: {0}]   ;;  %s3636_s26 = inlined_call_operand.vmem [shape: f32[2,32], index: 26, kind: output, shape index: {1}]   ;;  %s3637_s27 = inlined_call_operand.vmem [shape: f32[2,3], index: 27, kind: output, shape index: {2}]  }
   0x1   :  { %3645 = sst [smem:[#allocation9_spill]] %s3610_s0 }
   0x2   :  { %3646 = sst [smem:[#allocation10_spill]] %s3611_s1 }
   0x3   :  { %3647 = sst [smem:[#allocation11_spill]] %s3612_s2 }
   0x4   :  { %3648 = sst [smem:[#allocation12_spill]] %s3613_s3 }
   0x5   :  { %3649 = sst [smem:[#allocation13_spill]] %s3614_s4 }
   0x6   :  { %3650 = sst [smem:[#allocation14_spill]] %s3615_s5 }
   0x7   :  { %3651 = sst [smem:[#allocation15_spill]] %s3616_s6 }
   0x8   :  { %3652 = sst [smem:[#allocation16_spill]] %s3617_s7 }
   0x9   :  { %3653 = sst [smem:[#allocation17_spill]] %s3618_s8 }
   0xa   :  { %3654 = sst [smem:[#allocation18_spill]] %s3619_s9 }
   0xb   :  { %3655 = sst [smem:[#allocation19_spill]] %s3620_s10 }
   0xc   :  { %3656 = sst [smem:[#allocation20_spill]] %s3621_s11 }
   0xd   :  { %3657 = sst [smem:[#allocation21_spill]] %s3622_s12 }
   0xe   :  { %3658 = sst [smem:[#allocation22_spill]] %s3623_s13 }
   0xf   :  { %3659 = sst [smem:[#allocation23_spill]] %s3625_s15 }
  0x10   :  { %3660 = sst [smem:[#allocation24_spill]] %s3630_s20 }
  0x11   :  { %3661 = sst [smem:[#allocation25_spill]] %s3631_s21 }
  0x12   :  { %3662 = sst [smem:[#allocation26_spill]] %s3632_s22 }
  0x13   :  { %3663 = sst [smem:[#allocation27_spill]] %s3633_s23 }
  0x14   :  { %3664 = sst [smem:[#allocation28_spill]] %s3634_s24 }
  0x15   :  { %3665 = sst [smem:[#allocation29_spill]] %s3635_s25 }
  0x16   :  { %3666 = sst [smem:[#allocation30_spill]] %s3636_s26 }
  0x17   :  { %3667 = sst [smem:[#allocation31_spill]] %s3637_s27 }
  0x18   :  { %s3668_s8 = sld [smem:[#allocation9_spill]] }
  0x1e   :  { %s33_s21 = sshll.u32 %s3668_s8, 4  ;;  %s34_s21 = int_to_ptr.vmem [resolvable:$true] %s33_s21 }
  0x1f   :  { %s3010_s30 = scalar_lea.vmem %s34_s21, 16  ;;  %p3015_p1 = scmp.lt.s32.totalorder %s34_s21, %s34_s21 }
  0x20   :  { %p3011_p0 = scmp.ne.s32.totalorder %s34_s21, %s3010_s30  ;;  %p3016_p2 = scmp.lt.s32.totalorder %s3010_s30, %s3010_s30 }
  0x22   :  { %p3017_p3 = por %p3016_p2, %p3015_p1 }
  0x24   :  { %p3018_p4 = pnand %p3017_p3, %p3011_p0 }
  0x26   :  { %3021 = shalt.err (!%p3018_p4)  }
  0x27   :  { %s3032_s9 = smov [#allocation4]  }
  0x28   :  { %36 = dma.vmem_to_smem %s34_s21, 16, %s3032_s9, [#allocation3] }
  0x29   :  { %3026 = dma.done.wait [#allocation3], 16 }
  0x2a   :  { %3027 = vsyncadd [#allocation3], 4294967280 }
  0x2b   :  { %38 = sfence }
  0x2c   :  { %s3180_s5 = smov 0  }
  0x2d LB: > { %3669 = sst [smem:[#allocation6_spill]] %s3030_s5  ;;  %s3186_s28 = sadd.s32 4294967295, %s3030_s5   ;;  %s3030_s5 = sphi %s3180_s5, %s44_s5  }
  0x2e   : > { %p2681_p5 = scmp.ge.s32.totalorder %s3030_s5, 1  ;;  %p906_p6 = scmp.lt.s32.totalorder %s3030_s5, 6 }
  0x30   : > { %p907_p7 = pnand %p2681_p5, %p906_p6 }
  0x32   : > { %910 = sbr.rel (%p907_p7) target bundleno = 3773 (0xebd), region = 116 }
  0x37   : > { %s1045_s21 = sld [smem:[#allocation4 + %s3186_s28]] }
  0x38   : > { %s1052_s0 = sld [smem:[#allocation4 + %s3186_s28]] }
  0x39   : > { %s1059_s10 = sld [smem:[#allocation4 + %s3186_s28]] }
  0x3a   : > { %s1066_s29 = sld [smem:[#allocation4 + %s3186_s28]] }
  0x3b   : > { %s1072_s1 = sld [smem:[#allocation4 + %s3186_s28]] }
  0x3c   : > { %s1078_s6 = sld [smem:[#allocation4 + %s3186_s28]] }
  0x3d   : > { %p1046_p8 = scmp.lt.s32.totalorder %s1045_s21, 3  ;;  %s1084_s11 = sld [smem:[#allocation4 + %s3186_s28]] }
  0x3e   : > { %p1053_p9 = scmp.lt.s32.totalorder %s1052_s0, 3  ;;  %s1091_s2 = sld [smem:[#allocation4 + %s3186_s28]] }
  0x3f   : > { %s3705_s21 = smov (!%p1046_p8, %s1045_s21), 3  ;;  %p1060_p10 = scmp.lt.s32.totalorder %s1059_s10, 3 }
  0x40   : > { %s3707_s0 = smov (!%p1053_p9, %s1052_s0), 3  ;;  %s2761_s3 = sshll.u32 %s3705_s21, 6 }
  0x41   : > { %s3670_s8 = sld [smem:[#allocation14_spill]]  ;;  %s2762_s9 = sshll.u32 %s3707_s0, 6 }
  0x42   : > { %s3671_s27 = sld [smem:[#allocation15_spill]]  ;;  %p1067_p11 = scmp.lt.s32.totalorder %s1066_s29, 3 }
  0x43   : > { %s3709_s10 = smov (!%p1060_p10, %s1059_s10), 3  ;;  %p1073_p12 = scmp.lt.s32.totalorder %s1072_s1, 3 }
  0x44   : > { %s3711_s29 = smov (!%p1067_p11, %s1066_s29), 3  ;;  %s2763_s22 = sshll.u32 %s3709_s10, 6 }
  0x45   : > { %s3672_s21 = sld [smem:[#allocation16_spill]]  ;;  %s2688_s7 = sshll.u32 %s3711_s29, 1 }
  0x46   : > { %s3673_s0 = sld [smem:[#allocation17_spill]]  ;;  %p1079_p13 = scmp.lt.s32.totalorder %s1078_s6, 3 }
  0x47   : > { %s3201_s30 = scalar_lea.vmem %s3670_s8, %s2761_s3  ;;  %s3713_s1 = smov (!%p1073_p12, %s1072_s1), 3 }
  0x48   : > { %s3206_s24 = scalar_lea.vmem %s3671_s27, %s2762_s9  ;;  %s3715_s6 = smov (!%p1079_p13, %s1078_s6), 3 }
  0x49   : > { %s2689_s26 = sshll.u32 %s3713_s1, 1  ;;  %p1085_p0 = scmp.lt.s32.totalorder %s1084_s11, 3 }
  0x4a   : > { %s3674_s25 = sld [smem:[#allocation18_spill]]  ;;  %s2690_s5 = sshll.u32 %s3715_s6, 1 }
  0x4b   : > { %s3211_s20 = scalar_lea.vmem %s3672_s21, %s2763_s22  ;;  %s3675_s9 = sld [smem:[#allocation19_spill]] }
  0x4c   : > { %s3216_s8 = scalar_lea.vmem %s3673_s0, %s2688_s7  ;;  %p1092_p1 = scmp.lt.s32.totalorder %s1091_s2, 3 }
  0x4d   : > { %s3717_s11 = smov (!%p1085_p0, %s1084_s11), 3  ;;  %s1096_s7 = sld [smem:[#allocation4 + %s3186_s28]] }
  0x4e   : > { %s3719_s2 = smov (!%p1092_p1, %s1091_s2), 3  ;;  %s2764_s1 = sshll.u32 %s3717_s11, 5 }
  0x4f   : > { %3677 = sst [smem:[#allocation8_spill]] %s3719_s2  ;;  %p2697_p10 = scmp.ne.s32.totalorder %s3186_s28, 0 }
  0x50   : > { %s3221_s22 = scalar_lea.vmem %s3674_s25, %s2689_s26  ;;  %s3678_s0 = sld [smem:[#allocation20_spill]] }
  0x51   : > { %s3226_s21 = scalar_lea.vmem %s3675_s9, %s2690_s5  ;;  %s1101_s25 = sld [smem:[#allocation4 + %s3186_s28]] }
  0x52   : > { %3676 = sst [smem:[#allocation7_spill]] %s3226_s21 }
  0x53   : > { %s1106_s10 = sld [smem:[#allocation4 + %s3186_s28]]  ;;  %p1097_p2 = scmp.lt.s32.totalorder %s1096_s7, 3 }
  0x54   : > { %s1113_s5 = sld [smem:[#allocation4 + %s3186_s28]] }
  0x55   : > { %s1118_s29 = sld [smem:[#allocation4 + %s3186_s28]]  ;;  %s3721_s7 = smov (!%p1097_p2, %s1096_s7), 3 }
  0x56   : > { %s3234_s27 = scalar_lea.vmem %s3678_s0, %s2764_s1  ;;  %s1125_s9 = sld [smem:[#allocation4 + %s3186_s28]] }
  0x57   : > { %s1130_s21 = sld [smem:[#allocation4 + %s3186_s28]]  ;;  %p1102_p3 = scmp.lt.s32.totalorder %s1101_s25, 3 }
  0x58   : > { %s3681_s15 = sld [smem:[#allocation23_spill]] }
  0x59   : > { %p1107_p4 = scmp.lt.s32.totalorder %s1106_s10, 3  ;;  %s3723_s25 = smov (!%p1102_p3, %s1101_s25), 3 }
  0x5a   : > { %p1114_p5 = scmp.lt.s32.totalorder %s1113_s5, 3  ;;  %s1135_s13 = sld [smem:[#allocation4 + %s3186_s28]] }
  0x5b   : > { %s3725_s10 = smov (!%p1107_p4, %s1106_s10), 3  ;;  %p1119_p6 = scmp.lt.s32.totalorder %s1118_s29, 3 }
  0x5c   : > { %s2765_s23 = sshll.u32 %s3725_s10, 5  ;;  %p1126_p7 = scmp.lt.s32.totalorder %s1125_s9, 3 }
  0x5d   : > { %p1131_p8 = scmp.lt.s32.totalorder %s1130_s21, 3  ;;  %s3727_s5 = smov (!%p1114_p5, %s1113_s5), 3 }
  0x5e   : > { %s3261_s2 = scalar_lea.vmem %s3681_s15, %s2765_s23  ;;  %s3729_s29 = smov (!%p1119_p6, %s1118_s29), 3 }
  0x5f   : > { %s1116_s3 = scalar_lea.vmem %s3626_s16, %s3727_s5  ;;  %s2766_s4 = sshll.u32 %s3729_s29, 6 }
  0x60   : > { %s3273_s10 = scalar_lea.vmem %s3627_s17, %s2766_s4  ;;  %s3731_s9 = smov (!%p1126_p7, %s1125_s9), 3 }
  0x61   : > { %s3733_s21 = smov (!%p1131_p8, %s1130_s21), 3  ;;  %p1136_p9 = scmp.lt.s32.totalorder %s1135_s13, 3 }
  0x62   : > { %s1133_s1 = scalar_lea.vmem %s3629_s19, %s3733_s21  ;;  %s3682_s4 = sld [smem:[#allocation24_spill]] }
  0x63   : > { %s3735_s13 = smov (!%p1136_p9, %s1135_s13), 3  ;;  %s3683_s23 = sld [smem:[#allocation10_spill]] (!%p2697_p10) }
  0x64   : > { %1144 = sbr.rel (%p2697_p10) target bundleno = 419 (0x1a3), region = 120  ;;  %s3685_s15 = sld [smem:[#allocation13_spill]] (!%p2697_p10) }
  0x68   : > { %s1138_s0 = scalar_lea.vmem %s3682_s4, %s3735_s13  ;;  %s3684_s4 = sld [smem:[#allocation12_spill]] (!%p2697_p10) }
  0x69   : > { %v1145_v0 = vld [vmem:[%s3683_s23] sm:$0xff]  ;;  %vm1149_vm0 = vcmask 261120   ;;  %v1146_v1 = vld [vmem:[%s3683_s23 + $0x8] sm:$0xff] }
  0x6a   : > { %v1150_v2 = vsel %vm1149_vm0, %v1145_v0, 0.0  ;;  %v1153_v3 = vsel %vm1149_vm0, %v1146_v1, 0.0  ;;  %v2699_v23 = vld [vmem:[%s3685_s15] ss:$0 sm:$0xff] }
  0x6b   : > { %1151 = vadd.xlane.f32.xlu0 %v1150_v2 }
  0x6e   : > { %v2698_v21 = vld [vmem:[%s3684_s4] ss:$0 sm:$0xff] }
  0x6f   : > { %1154 = vadd.xlane.f32.xlu0 %v1153_v3 }
  0xf4   : > { %v1152_v4 = vpop.xlane.xlu0 %1151 }
  0xf5   : > { %v1157_v5 = vmul.f32 0.03125, %v1152_v4 }
  0xf7   : > { %v1159_v6 = vsub.f32 %v1145_v0, %v1157_v5 }
  0xf8   : > { %v1155_v7 = vpop.xlane.xlu0 %1154 }
  0xf9   : > { %v1158_v8 = vmul.f32 0.03125, %v1155_v7  ;;  %v1161_v9 = vmul.f32 %v1159_v6, %v1159_v6 }
  0xfb   : > { %v1160_v10 = vsub.f32 %v1146_v1, %v1158_v8  ;;  %v1163_v11 = vsel %vm1149_vm0, %v1161_v9, 0.0 }
  0xfc   : > { %1164 = vadd.xlane.f32.xlu1 %v1163_v11 }
  0xfd   : > { %v1162_v12 = vmul.f32 %v1160_v10, %v1160_v10 }
  0xff   : > { %v1166_v13 = vsel %vm1149_vm0, %v1162_v12, 0.0 }
 0x100   : > { %1167 = vadd.xlane.f32.xlu1 %v1166_v13 }
 0x185   : > { %v1165_v14 = vpop.xlane.xlu1 %1164 }
 0x186   : > { %v1169_v15 = vmul.f32 0.03125, %v1165_v14 }
 0x188   : > { %v1171_v16 = vadd.f32 1e-05, %v1169_v15 }
 0x189   : > { %v1168_v17 = vpop.xlane.xlu1 %1167 }
 0x18a   : > { %2976 = vrsqrt.f32 %v1171_v16  ;;  %v1170_v18 = vmul.f32 0.03125, %v1168_v17 }
 0x18c   : > { %v1172_v19 = vadd.f32 1e-05, %v1170_v18 }
 0x18e   : > { %2978 = vrsqrt.f32 %v1172_v19 }
 0x197   : > { %v2977_v20 = vpop.eup %2976 }
 0x198   : > { %v1175_v22 = vmul.f32 %v2977_v20, %v1159_v6 }
 0x19a   : > { %v1183_v24 = vmul.f32 %v2698_v21, %v1175_v22 }
 0x19b   : > { %v2979_v25 = vpop.eup %2978 }
 0x19c   : > { %v1191_v26 = vadd.f32 %v2699_v23, %v1183_v24  ;;  %v1176_v27 = vmul.f32 %v2979_v25, %v1160_v10 }
 0x19e   : > { %1193 = vst.msk [vmem:[#allocation2] sm:$0xff] %vm1149_vm0, %v1191_v26  ;;  %v1184_v28 = vmul.f32 %v2698_v21, %v1176_v27 }
 0x1a0   : > { %v1192_v29 = vadd.f32 %v2699_v23, %v1184_v28 }
 0x1a2   : > { %1194 = vst.msk [vmem:[#allocation2 + $0x8] sm:$0xff] %vm1149_vm0, %v1192_v29 }
 0x1a3 PF: > { %v1262_v30 = vld [vmem:[%s3206_s24 + $0x10] sm:$0xff]  ;;  %v1263_v31 = vld [vmem:[%s3206_s24 + $0x18] sm:$0xff]  ;;  %p1195_p11 = scmp.ge.s32.totalorder %s3186_s28, 4  ;;  %v3033_v33 = vmov 0.0   ;;  %v1260_v36 = vld [vmem:[%s3206_s24] sm:$0xff]  ;;  %vm3034_vm1 = vmmov 0  }
 0x1a4   : > { %v1203_v32 = vld [vmem:[%s3201_s30 + $0x10] sm:$0xff]  ;;  %2827 = vmatprep.subr.bf16.mxu1 %v3033_v33  ;;  %v1265_v34 = vpack.c.bf16 %v1263_v31, %v1262_v30  ;;  %2819 = vmatprep.subr.bf16.mxu0 %v3033_v33  ;;  %v1204_v35 = vld [vmem:[%s3201_s30 + $0x18] sm:$0xff]  ;;  %v1261_v37 = vld [vmem:[%s3206_s24 + $0x8] sm:$0xff]  ;;  %vm1215_vm2 = vcmask 261120   ;;  %vm1370_vm3 = vcmask 130048   ;;  %s3686_s6 = sld [smem:[#allocation11_spill]] }
 0x1a5   : > { %v1207_v38 = vpack.c.bf16 %v1204_v35, %v1203_v32  ;;  %v1201_v39 = vld [vmem:[%s3201_s30] sm:$0xff]  ;;  %v1202_v40 = vld [vmem:[%s3201_s30 + $0x8] sm:$0xff]  ;;  %2831 = vmatprep.mubr.msk.bf16.mxu1 %vm3034_vm1, %v3033_v33  ;;  %s1196_s11 = scalar_select %p1195_p11, 1, 0  ;;  %2823 = vmatprep.mubr.msk.bf16.mxu0 %vm3034_vm1, %v3033_v33  ;;  %v1264_v41 = vpack.c.bf16 %v1261_v37, %v1260_v36  ;;  %v1316_v2 = vld [vmem:[%s3211_s20 + $0x10] sm:$0xff]  ;;  %vm1426_vm4 = vcmask 64512  }
 0x1a6   : > { %2828 = vmatpush3.bf16.msra.mxu1 %v1265_v34  ;;  %v1206_v42 = vpack.c.bf16 %v1202_v40, %v1201_v39  ;;  %v2703_v46 = vld [vmem:[%s3221_s22] ss:$0 sm:$0xff]  ;;  %v1317_v3 = vld [vmem:[%s3211_s20 + $0x18] sm:$0xff]  ;;  %v1315_v6 = vld [vmem:[%s3211_s20 + $0x8] sm:$0xff]  ;;  %vm1443_vm5 = vcmask 1043456   ;;  %s3691_s4 = sld [smem:[#allocation22_spill]] }
 0x1a7   : > { %2820 = vmatpush3.bf16.msra.mxu0 %v1207_v38  ;;  %2829 = vmatprep.subr.bf16.mxu1 %v3033_v33  ;;  %s2700_s29 = sshll.u32 %s1196_s11, 4  ;;  %v2701_v50 = vld [vmem:[%s3216_s8] ss:$0 sm:$0xff]  ;;  %v1319_v5 = vpack.c.bf16 %v1317_v3, %v1316_v2  ;;  %v2722_v3 = vld [vmem:[%s3206_s24 + $0x28] sm:$0xff]  ;;  %vm2239_vm6 = vcmask 523264  }
 0x1a8   : > { %2821 = vmatprep.subr.bf16.mxu0 %v3033_v33  ;;  %s3331_s26 = scalar_lea.vmem [#allocation2], %s2700_s29  ;;  %v1314_v4 = vld [vmem:[%s3211_s20] sm:$0xff]  ;;  %s3687_s29 = sld [smem:[#allocation7_spill]] }
 0x1a9   : > { %v3334_v43 = vld [vmem:[%s3331_s26] sm:$0xff]  ;;  %v3337_v44 = vld [vmem:[%s3331_s26 + $0x8] sm:$0xff]  ;;  %v1318_v7 = vpack.c.bf16 %v1315_v6, %v1314_v4 }
 0x1aa   : > { %2830 = vmatpush3.bf16.msra.mxu1 %v1264_v41  ;;  %v3341_v45 = vpack.c.bf16 %v3337_v44, %v3334_v43  ;;  %v3378_v9 = vld [vmem:[%s3686_s6] ss:$0 sm:$0xff]  ;;  %v3385_v17 = vld [vmem:[%s3686_s6 + $0x1] ss:$0 sm:$0xff] }
 0x1ab   : > { %2822 = vmatpush3.bf16.msra.mxu0 %v1206_v42  ;;  %2843 = vmatprep.subr.bf16.mxu1 %v3033_v33  ;;  %v2721_v2 = vld [vmem:[%s3206_s24 + $0x20] sm:$0xff] }
 0x1ac   : > { %2835 = vmatprep.subr.bf16.mxu0 %v3033_v33  ;;  %v1669_v4 = vpack.c.bf16 %v2722_v3, %v2721_v2  ;;  %s3692_s12 = scalar_lea.vmem %s3691_s4, %s3721_s7 }
 0x1ad   : > { %2832 = vmatmul.mubr.msk.bf16.vlgmr.msra.gmra.mxu1 %vm1215_vm2, %v3341_v45 }
 0x1ae   : > { %2824 = vmatmul.mubr.msk.bf16.vlgmr.msra.gmra.mxu0 %vm1215_vm2, %v3341_v45  ;;  %2845 = vmatprep.mubr.msk.bf16.mxu1 %vm3034_vm1, %v3033_v33  ;;  %v2705_v35 = vld [vmem:[%s3687_s29] ss:$0 sm:$0xff] }
 0x1af   : > { %2839 = vmatprep.mubr.msk.bf16.mxu0 %vm3034_vm1, %v3033_v33  ;;  %2836 = vmatpush3.bf16.msra.mxu0 %v1319_v5 }
 0x1b0   : > { %2837 = vmatprep.subr.bf16.mxu0 %v3033_v33 }
 0x1b3   : > { %2838 = vmatpush3.bf16.msra.mxu0 %v1318_v7 }
 0x1b4   : > { %2849 = vmatprep.subr.bf16.mxu0 %v3033_v33 }
 0x1b6   : > { %2840 = vmatmul.mubr.msk.bf16.vlgmr.msra.gmra.mxu0 %vm1215_vm2, %v3341_v45 }
 0x1b7   : > { %2851 = vmatprep.mubr.msk.bf16.mxu0 %vm3034_vm1, %v3033_v33 }
 0x26d   : > { %v1307_v47 = vpop.f32.mrf.mxu1 }
 0x26e   : > { %v1308_v48 = vadd.f32 %v2703_v46, %v1307_v47  ;;  %v1253_v49 = vpop.f32.mrf.mxu0  ;;  %v2716_v47 = vld [vmem:[%s3201_s30 + $0x30] sm:$0xff] }
 0x26f   : > { %v2833_v51 = vpop.f32.mrf.mxu1  ;;  %v1254_v56 = vadd.f32 %v2701_v50, %v1253_v49 }
 0x270   : > { %v1369_v52 = vpack.c.bf16 %v1308_v48, %v1308_v48  ;;  %v2825_v53 = vpop.f32.mrf.mxu0  ;;  %v2717_v48 = vld [vmem:[%s3201_s30 + $0x38] sm:$0xff]  ;;  %v2715_v51 = vld [vmem:[%s3201_s30 + $0x28] sm:$0xff] }
 0x271   : > { %v1310_v54 = vpop.f32.mrf.mxu1  ;;  %v1368_v61 = vpack.c.bf16 %v1254_v56, %v1254_v56  ;;  %v1614_v49 = vpack.c.bf16 %v2717_v48, %v2716_v47 }
 0x272   : > { %v1375_v55 = vsel %vm1370_vm3, %v1369_v52, 0  ;;  %v1311_v57 = vadd.f32 %v2703_v46, %v1310_v54  ;;  %v1256_v58 = vpop.f32.mrf.mxu0 }
 0x273   : > { %v2834_v59 = vpop.f32.mrf.mxu1  ;;  %2844 = vmatpush3.bf16.xpose.msra.mxu1 %v1375_v55  ;;  %v1257_v0 = vadd.f32 %v2701_v50, %v1256_v58  ;;  %v2714_v50 = vld [vmem:[%s3201_s30 + $0x20] sm:$0xff] }
 0x274   : > { %v2826_v60 = vpop.f32.mrf.mxu0  ;;  %2855 = vmatprep.subr.bf16.mxu1 %v3033_v33  ;;  %v1488_v62 = vpack.c.bf16 %v1311_v57, %v1311_v57  ;;  %v1613_v52 = vpack.c.bf16 %v2715_v51, %v2714_v50 }
 0x275   : > { %v1487_v1 = vpack.c.bf16 %v1257_v0, %v1257_v0  ;;  %v2723_v60 = vld [vmem:[%s3206_s24 + $0x30] sm:$0xff] }
 0x276   : > { %v1493_v63 = vsel %vm1370_vm3, %v1488_v62, 0  ;;  %v1361_v36 = vpop.f32.mrf.mxu0 }
 0x277   : > { %v1362_v37 = vadd.f32 %v2705_v35, %v1361_v36 }
 0x278   : > { %v2841_v38 = vpop.f32.mrf.mxu0 }
 0x279   : > { %v1439_v39 = vpack.c.bf16 %v1362_v37, %v1362_v37  ;;  %v2730_v37 = vld [vmem:[%s3211_s20 + $0x30] sm:$0xff]  ;;  %v2731_v38 = vld [vmem:[%s3211_s20 + $0x38] sm:$0xff] }
 0x27a   : > { %2846 = vmatmul.mubr.msk.bf16.vlgmr.msra.gmra.mxu1 %vm1370_vm3, %v1368_v61  ;;  %v1364_v40 = vpop.f32.mrf.mxu0  ;;  %v2724_v61 = vld [vmem:[%s3206_s24 + $0x38] sm:$0xff] }
 0x27b   : > { %2856 = vmatpush3.bf16.xpose.msra.mxu1 %v1493_v63  ;;  %2857 = vmatprep.mubr.msk.bf16.mxu1 %vm3034_vm1, %v3033_v33  ;;  %v1445_v41 = vsel %vm1443_vm5, %v1439_v39, 0  ;;  %v1365_v42 = vadd.f32 %v2705_v35, %v1364_v40  ;;  %v1670_v0 = vpack.c.bf16 %v2724_v61, %v2723_v60  ;;  %v2728_v39 = vld [vmem:[%s3211_s20 + $0x20] sm:$0xff]  ;;  %v1726_v40 = vpack.c.bf16 %v2731_v38, %v2730_v37 }
 0x27c   : > { %2867 = vmatprep.subr.bf16.mxu1 %v3033_v33  ;;  %v2842_v46 = vpop.f32.mrf.mxu0  ;;  %2850 = vmatpush3.bf16.msra.mxu0 %v1445_v41  ;;  %v2729_v41 = vld [vmem:[%s3211_s20 + $0x28] sm:$0xff]  ;;  %s3688_s20 = sld [smem:[#allocation8_spill]] }
 0x27d   : > { %2861 = vmatprep.subr.bf16.mxu0 %v3033_v33  ;;  %v1557_v56 = vpack.c.bf16 %v1365_v42, %v1365_v42  ;;  %v1725_v42 = vpack.c.bf16 %v2729_v41, %v2728_v39 }
 0x27f   : > { %v1562_v59 = vsel %vm1443_vm5, %v1557_v56, 0 }
 0x282   : > { %2858 = vmatmul.mubr.msk.bf16.vlgmr.msra.gmra.mxu1 %vm1370_vm3, %v1487_v1 }
 0x283   : > { %2871 = vmatprep.mubr.msk.bf16.mxu1 %vm3034_vm1, %v3033_v33  ;;  %2868 = vmatpush3.bf16.msra.mxu1 %v1614_v49 }
 0x284   : > { %2869 = vmatprep.subr.bf16.mxu1 %v3033_v33 }
 0x287   : > { %2870 = vmatpush3.bf16.msra.mxu1 %v1613_v52 }
 0x288   : > { %2883 = vmatprep.subr.bf16.mxu1 %v3033_v33 }
 0x28a   : > { %2872 = vmatmul.mubr.msk.bf16.vlgmr.msra.gmra.mxu1 %vm1215_vm2, %v3341_v45 }
 0x28b   : > { %2887 = vmatprep.mubr.msk.bf16.mxu1 %vm3034_vm1, %v3033_v33  ;;  %2884 = vmatpush3.bf16.msra.mxu1 %v1726_v40 }
 0x28c   : > { %2885 = vmatprep.subr.bf16.mxu1 %v3033_v33 }
 0x28f   : > { %2886 = vmatpush3.bf16.msra.mxu1 %v1725_v42 }
 0x290   : > { %2897 = vmatprep.subr.bf16.mxu1 %v3033_v33 }
 0x292   : > { %2888 = vmatmul.mubr.msk.bf16.vlgmr.msra.gmra.mxu1 %vm1215_vm2, %v3341_v45 }
 0x293   : > { %2899 = vmatprep.mubr.msk.bf16.mxu1 %vm3034_vm1, %v3033_v33 }
 0x33a   : > { %v1411_v8 = vpop.f32.mrf.mxu1 }
 0x33b   : > { %v1417_v10 = vmul.f32 0.25, %v1411_v8 }
 0x33c   : > { %v2847_v11 = vpop.f32.mrf.mxu1 }
 0x33d   : > { %v1425_v12 = vadd.f32 %v3378_v9, %v1417_v10 }
 0x33e   : > { %v1414_v13 = vpop.f32.mrf.mxu1 }
 0x33f   : > { %v1427_v14 = vsel %vm1426_vm4, %v1425_v12, -inf }
 0x340   : > { %1428 = vmax.xlane.f32.xlu0 %v1427_v14  ;;  %v2848_v15 = vpop.f32.mrf.mxu1 }
 0x342   : > { %v1529_v16 = vpop.f32.mrf.mxu1 }
 0x343   : > { %v1535_v18 = vmul.f32 0.25, %v1529_v16 }
 0x344   : > { %v2859_v19 = vpop.f32.mrf.mxu1 }
 0x345   : > { %v1544_v20 = vadd.f32 %v3385_v17, %v1535_v18 }
 0x346   : > { %v1532_v21 = vpop.f32.mrf.mxu1 }
 0x347   : > { %v1545_v22 = vsel %vm1426_vm4, %v1544_v20, -inf }
 0x348   : > { %1546 = vmax.xlane.f32.xlu0 %v1545_v22  ;;  %v2860_v23 = vpop.f32.mrf.mxu1 }
 0x34a   : > { %v1657_v5 = vpop.f32.mrf.mxu1 }
 0x34c   : > { %v2873_v6 = vpop.f32.mrf.mxu1 }
 0x34e   : > { %v1660_v7 = vpop.f32.mrf.mxu1 }
 0x350   : > { %v2874_v8 = vpop.f32.mrf.mxu1 }
 0x352   : > { %v1769_v60 = vpop.f32.mrf.mxu1 }
 0x3c9   : > { %v1429_v24 = vpop.xlane.xlu0 %1428 }
 0x3ca   : > { %v1430_v25 = vsub.f32 %v1425_v12, %v1429_v24  ;;  %v2719_v24 = vld [vmem:[%s3216_s8 + $0x1] ss:$0 sm:$0xff]  ;;  %s3689_s8 = sld [smem:[#allocation21_spill]] }
 0x3cb   : > { %v1661_v35 = vadd.f32 %v2719_v24, %v1660_v7 }
 0x3cc   : > { %v1431_v26 = vmul.f32 1.442695, %v1430_v25 }
 0x3cd   : > { %v1885_v36 = vpack.c.bf16 %v1661_v35, %v1661_v35 }
 0x3ce   : > { %2980 = vpow2.f32 %v1431_v26 }
 0x3d1   : > { %v1547_v27 = vpop.xlane.xlu0 %1546 }
 0x3d2   : > { %v1548_v28 = vsub.f32 %v1544_v20, %v1547_v27  ;;  %v2726_v20 = vld [vmem:[%s3221_s22 + $0x1] ss:$0 sm:$0xff]  ;;  %s3690_s22 = scalar_lea.vmem %s3689_s8, %s3688_s20 }
 0x3d4   : > { %v1549_v29 = vmul.f32 1.442695, %v1548_v28  ;;  %v1658_v28 = vadd.f32 %v2719_v24, %v1657_v5  ;;  %v1604_v24 = vld [vmem:[%s3234_s27] sm:$0xff] }
 0x3d6   : > { %2982 = vpow2.f32 %v1549_v29 }
 0x3db   : > { %v2981_v30 = vpop.eup %2980 }
 0x3dc   : > { %v1433_v31 = vsel %vm1426_vm4, %v2981_v30, 0.0 }
 0x3dd   : > { %1434 = vadd.xlane.f32.xlu1 %v1433_v31  ;;  %v1776_v31 = vpack.c.bf16 %v1658_v28, %v1658_v28 }
 0x3e3   : > { %v2983_v32 = vpop.eup %2982 }
 0x3e4   : > { %v1551_v34 = vsel %vm1426_vm4, %v2983_v32, 0.0 }
 0x3e5   : > { %1552 = vadd.xlane.f32.xlu1 %v1551_v34 }
 0x466   : > { %v1435_v53 = vpop.xlane.xlu1 %1434 }
 0x467   : > { %2984 = vrcp.f32 %v1435_v53 }
 0x46e   : > { %v1553_v54 = vpop.xlane.xlu1 %1552 }
 0x46f   : > { %2986 = vrcp.f32 %v1553_v54 }
 0x474   : > { %v2985_v55 = vpop.eup %2984 }
 0x475   : > { %v1437_v57 = vmul.f32 %v2985_v55, %v2981_v30 }
 0x477   : > { %v1438_v58 = vpack.c.bf16 %v1437_v57, %v1437_v57 }
 0x479   : > { %2852 = vmatmul.mubr.msk.bf16.vlgmr.msra.gmra.mxu0 %vm1426_vm4, %v1438_v58 }
 0x47a   : > { %2862 = vmatpush3.bf16.msra.mxu0 %v1562_v59  ;;  %2863 = vmatprep.mubr.msk.bf16.mxu0 %vm3034_vm1, %v3033_v33  ;;  %v2733_v59 = vld [vmem:[%s3687_s29 + $0x1] ss:$0 sm:$0xff]  ;;  %s3693_s29 = scalar_lea.vmem %s3624_s14, %s3723_s25 }
 0x47b   : > { %2875 = vmatprep.subr.bf16.mxu0 %v3033_v33  ;;  %v1770_v61 = vadd.f32 %v2733_v59, %v1769_v60 }
 0x47c   : > { %v2987_v62 = vpop.eup %2986 }
 0x47d   : > { %v1555_v63 = vmul.f32 %v2987_v62, %v2983_v32  ;;  %v2889_v62 = vpop.f32.mrf.mxu1 }
 0x47f   : > { %v1556_v1 = vpack.c.bf16 %v1555_v63, %v1555_v63 }
 0x481   : > { %2864 = vmatmul.mubr.msk.bf16.vlgmr.msra.gmra.mxu0 %vm1426_vm4, %v1556_v1 }
 0x482   : > { %2876 = vmatpush3.bf16.msra.mxu0 %v1670_v0  ;;  %2879 = vmatprep.mubr.msk.bf16.mxu0 %vm3034_vm1, %v3033_v33 }
 0x483   : > { %2877 = vmatprep.subr.bf16.mxu0 %v3033_v33 }
 0x486   : > { %2878 = vmatpush3.bf16.msra.mxu0 %v1669_v4 }
 0x487   : > { %2891 = vmatprep.subr.bf16.mxu0 %v3033_v33 }
 0x489   : > { %2880 = vmatmul.mubr.msk.bf16.vlgmr.msra.gmra.mxu0 %vm1215_vm2, %v3341_v45 }
 0x48a   : > { %2893 = vmatprep.mubr.msk.bf16.mxu0 %vm3034_vm1, %v3033_v33 }
 0x539   : > { %v3422_v10 = vpop.f32.mrf.mxu0 }
 0x53b   : > { %v2853_v11 = vpop.f32.mrf.mxu0 }
 0x53c   : > { %v1772_v11 = vpop.f32.mrf.mxu1 }
 0x53d   : > { %v1484_v12 = vpop.f32.mrf.mxu0 }
 0x53e   : > { %v2890_v12 = vpop.f32.mrf.mxu1 }
 0x53f   : > { %v2854_v13 = vpop.f32.mrf.mxu0 }
 0x541   : > { %v3424_v14 = vpop.f32.mrf.mxu0 }
 0x542   : > { %v1606_v15 = vpack.c.bf16 %v3424_v14, %v3422_v10 }
 0x543   : > { %v2865_v16 = vpop.f32.mrf.mxu0 }
 0x545   : > { %v1601_v18 = vpop.f32.mrf.mxu0 }
 0x546   : > { %v1773_v18 = vadd.f32 %v2733_v59, %v1772_v11 }
 0x547   : > { %v2866_v19 = vpop.f32.mrf.mxu0 }
 0x549   : > { %v1713_v21 = vpop.f32.mrf.mxu0 }
 0x54a   : > { %v1714_v22 = vadd.f32 %v2726_v20, %v1713_v21 }
 0x54b   : > { %v2881_v23 = vpop.f32.mrf.mxu0 }
 0x54c   : > { %v1777_v25 = vpack.c.bf16 %v1714_v22, %v1714_v22 }
 0x54d   : > { %v1716_v26 = vpop.f32.mrf.mxu0 }
 0x54e   : > { %v1782_v27 = vsel %vm1370_vm3, %v1777_v25, 0  ;;  %v1717_v29 = vadd.f32 %v2726_v20, %v1716_v26  ;;  %v1947_v20 = vpack.c.bf16 %v1773_v18, %v1773_v18  ;;  %v1605_v25 = vld [vmem:[%s3234_s27 + $0x8] sm:$0xff] }
 0x54f   : > { %v2882_v30 = vpop.f32.mrf.mxu0  ;;  %2892 = vmatpush3.bf16.xpose.msra.mxu0 %v1782_v27  ;;  %v1607_v28 = vpack.c.bf16 %v1605_v25, %v1604_v24  ;;  %v2745_v24 = vld [vmem:[%s3693_s29] ss:$0 sm:$0xff] }
 0x550   : > { %2903 = vmatprep.subr.bf16.mxu0 %v3033_v33  ;;  %v1886_v32 = vpack.c.bf16 %v1717_v29, %v1717_v29  ;;  %v1952_v23 = vsel %vm1443_vm5, %v1947_v20, 0  ;;  %v2739_v30 = vld [vmem:[%s3234_s27 + $0x10] sm:$0xff]  ;;  %v2744_v20 = vld [vmem:[%s3692_s12] ss:$0 sm:$0xff] }
 0x552   : > { %v1891_v34 = vsel %vm1370_vm3, %v1886_v32, 0 }
 0x556   : > { %2894 = vmatmul.mubr.msk.bf16.vlgmr.msra.gmra.mxu0 %vm1370_vm3, %v1776_v31  ;;  %v2740_v31 = vld [vmem:[%s3234_s27 + $0x18] sm:$0xff] }
 0x557   : > { %2904 = vmatpush3.bf16.xpose.msra.mxu0 %v1891_v34  ;;  %2905 = vmatprep.mubr.msk.bf16.mxu0 %vm3034_vm1, %v3033_v33  ;;  %v1998_v32 = vpack.c.bf16 %v2740_v31, %v2739_v30  ;;  %v2226_v30 = vld [vmem:[%s3273_s10 + $0x38] sm:$0xff] }
 0x558   : > { %2915 = vmatprep.subr.bf16.mxu0 %v3033_v33 }
 0x55e   : > { %2906 = vmatmul.mubr.msk.bf16.vlgmr.msra.gmra.mxu0 %vm1370_vm3, %v1885_v36 }
 0x55f   : > { %2917 = vmatprep.mubr.msk.bf16.mxu0 %vm3034_vm1, %v3033_v33  ;;  %2916 = vmatpush3.bf16.msra.mxu0 %v1998_v32  ;;  %v2223_v32 = vld [vmem:[%s3273_s10 + $0x20] sm:$0xff] }
 0x560   : > { %2927 = vmatprep.subr.bf16.mxu0 %v3033_v33 }
 0x616   : > { %v1818_v46 = vpop.f32.mrf.mxu0 }
 0x617   : > { %v1824_v47 = vmul.f32 0.25, %v1818_v46 }
 0x618   : > { %v2895_v48 = vpop.f32.mrf.mxu0 }
 0x619   : > { %v1825_v49 = vadd.f32 %v3378_v9, %v1824_v47  ;;  %v1838_v9 = vpack.c.bf16 %v1770_v61, %v1770_v61  ;;  %v2743_v48 = vld [vmem:[%s3690_s22] ss:$0 sm:$0xff] }
 0x61a   : > { %v1821_v50 = vpop.f32.mrf.mxu0 }
 0x61b   : > { %v1826_v51 = vsel %vm1426_vm4, %v1825_v49, -inf  ;;  %v1843_v63 = vsel %vm1443_vm5, %v1838_v9, 0 }
 0x61c   : > { %1827 = vmax.xlane.f32.xlu0 %v1826_v51  ;;  %v2896_v52 = vpop.f32.mrf.mxu0  ;;  %2898 = vmatpush3.bf16.msra.mxu1 %v1843_v63 }
 0x61d   : > { %2909 = vmatprep.subr.bf16.mxu1 %v3033_v33 }
 0x61e   : > { %v1927_v53 = vpop.f32.mrf.mxu0 }
 0x61f   : > { %v1933_v54 = vmul.f32 0.25, %v1927_v53 }
 0x620   : > { %v2907_v55 = vpop.f32.mrf.mxu0 }
 0x621   : > { %v1934_v56 = vadd.f32 %v3385_v17, %v1933_v54 }
 0x622   : > { %v1930_v45 = vpop.f32.mrf.mxu0 }
 0x623   : > { %v1935_v57 = vsel %vm1426_vm4, %v1934_v56, -inf }
 0x624   : > { %1936 = vmax.xlane.f32.xlu1 %v1935_v57  ;;  %v2908_v58 = vpop.f32.mrf.mxu0 }
 0x6a5   : > { %v1828_v0 = vpop.xlane.xlu0 %1827 }
 0x6a6   : > { %v1829_v1 = vsub.f32 %v1825_v49, %v1828_v0 }
 0x6a8   : > { %v1830_v2 = vmul.f32 1.442695, %v1829_v1 }
 0x6aa   : > { %2988 = vpow2.f32 %v1830_v2 }
 0x6ad   : > { %v1937_v17 = vpop.xlane.xlu1 %1936 }
 0x6ae   : > { %v1938_v3 = vsub.f32 %v1934_v56, %v1937_v17  ;;  %v2146_v17 = vld [vmem:[%s3261_s2 + $0x18] sm:$0xff] }
 0x6b0   : > { %v1939_v4 = vmul.f32 1.442695, %v1938_v3 }
 0x6b2   : > { %2990 = vpow2.f32 %v1939_v4  ;;  %v2143_v4 = vld [vmem:[%s3261_s2] sm:$0xff] }
 0x6b7   : > { %v2989_v5 = vpop.eup %2988 }
 0x6b8   : > { %v1832_v6 = vsel %vm1426_vm4, %v2989_v5, 0.0 }
 0x6b9   : > { %1833 = vadd.xlane.f32.xlu0 %v1832_v6 }
 0x6bf   : > { %v2991_v7 = vpop.eup %2990 }
 0x6c0   : > { %v1941_v8 = vsel %vm1426_vm4, %v2991_v7, 0.0 }
 0x6c1   : > { %1942 = vadd.xlane.f32.xlu1 %v1941_v8 }
 0x742   : > { %v1834_v13 = vpop.xlane.xlu0 %1833 }
 0x743   : > { %2992 = vrcp.f32 %v1834_v13 }
 0x74a   : > { %v1943_v16 = vpop.xlane.xlu1 %1942 }
 0x74b   : > { %2994 = vrcp.f32 %v1943_v16 }
 0x750   : > { %v2993_v19 = vpop.eup %2992 }
 0x751   : > { %v1836_v21 = vmul.f32 %v2993_v19, %v2989_v5  ;;  %v2144_v5 = vld [vmem:[%s3261_s2 + $0x8] sm:$0xff] }
 0x752   : > { %v2148_v6 = vpack.c.bf16 %v2144_v5, %v2143_v4 }
 0x753   : > { %v1837_v22 = vpack.c.bf16 %v1836_v21, %v1836_v21 }
 0x755   : > { %2900 = vmatmul.mubr.msk.bf16.vlgmr.msra.gmra.mxu1 %vm1426_vm4, %v1837_v22 }
 0x756   : > { %2910 = vmatpush3.bf16.msra.mxu1 %v1952_v23  ;;  %2911 = vmatprep.mubr.msk.bf16.mxu1 %vm3034_vm1, %v3033_v33 }
 0x757   : > { %2921 = vmatprep.subr.bf16.mxu1 %v3033_v33 }
 0x758   : > { %v2995_v26 = vpop.eup %2994 }
 0x759   : > { %v1945_v27 = vmul.f32 %v2995_v26, %v2991_v7 }
 0x75b   : > { %v1946_v29 = vpack.c.bf16 %v1945_v27, %v1945_v27 }
 0x75d   : > { %2912 = vmatmul.mubr.msk.bf16.vlgmr.msra.gmra.mxu1 %vm1426_vm4, %v1946_v29  ;;  %v2225_v29 = vld [vmem:[%s3273_s10 + $0x30] sm:$0xff] }
 0x75e   : > { %2922 = vmatpush3.bf16.msra.mxu1 %v1607_v28  ;;  %2923 = vmatprep.mubr.msk.bf16.mxu1 %vm3034_vm1, %v3033_v33  ;;  %v2231_v31 = vpack.c.bf16 %v2226_v30, %v2225_v29 }
 0x75f   : > { %2935 = vmatprep.subr.bf16.mxu1 %v3033_v33 }
 0x765   : > { %2924 = vmatmul.mubr.msk.bf16.vlgmr.msra.gmra.mxu1 %vm1370_vm3, %v1606_v15 }
 0x766   : > { %2943 = vmatprep.mubr.msk.bf16.mxu1 %vm3034_vm1, %v3033_v33  ;;  %2936 = vmatpush3.bf16.msra.mxu1 %v2231_v31  ;;  %v2750_v31 = vld [vmem:[%s1133_s1] ss:$0 sm:$0xff] }
 0x767   : > { %2937 = vmatprep.subr.bf16.mxu1 %v3033_v33 }
 0x815   : > { %v1879_v34 = vpop.f32.mrf.mxu1 }
 0x817   : > { %v2901_v35 = vpop.f32.mrf.mxu1 }
 0x819   : > { %v1882_v36 = vpop.f32.mrf.mxu1 }
 0x81a   : > { %v2221_v36 = vld [vmem:[%s3273_s10 + $0x10] sm:$0xff] }
 0x81b   : > { %v2902_v37 = vpop.f32.mrf.mxu1 }
 0x81c   : > { %v2222_v37 = vld [vmem:[%s3273_s10 + $0x18] sm:$0xff] }
 0x81d   : > { %v1988_v38 = vpop.f32.mrf.mxu1 }
 0x81e   : > { %v1997_v39 = vpack.c.bf16 %v1988_v38, %v1879_v34  ;;  %v2224_v34 = vld [vmem:[%s3273_s10 + $0x28] sm:$0xff]  ;;  %v2229_v38 = vpack.c.bf16 %v2222_v37, %v2221_v36 }
 0x81f   : > { %v2913_v40 = vpop.f32.mrf.mxu1  ;;  %v2230_v35 = vpack.c.bf16 %v2224_v34, %v2223_v32  ;;  %v2751_v34 = vld [vmem:[%s1138_s0] ss:$0 sm:$0xff] }
 0x820   : > { %2918 = vmatmul.mubr.msk.bf16.vlgmr.msra.gmra.mxu0 %vm1370_vm3, %v1997_v39  ;;  %v2219_v39 = vld [vmem:[%s3273_s10] sm:$0xff]  ;;  %v2220_v40 = vld [vmem:[%s3273_s10 + $0x8] sm:$0xff]  ;;  %s3694_s10 = scalar_lea.vmem %s3628_s18, %s3731_s9 }
 0x821   : > { %v1991_v10 = vpop.f32.mrf.mxu1  ;;  %2931 = vmatprep.mubr.msk.bf16.mxu0 %vm3034_vm1, %v3033_v33  ;;  %2938 = vmatpush3.bf16.msra.mxu1 %v2230_v35 }
 0x822   : > { %2939 = vmatprep.subr.bf16.mxu1 %v3033_v33  ;;  %v2228_v10 = vpack.c.bf16 %v2220_v40, %v2219_v39 }
 0x823   : > { %v2914_v14 = vpop.f32.mrf.mxu1 }
 0x824   : > { %v2746_v14 = vld [vmem:[%s1116_s3] ss:$0 sm:$0xff] }
 0x825   : > { %v2080_v15 = vpop.f32.mrf.mxu1  ;;  %2940 = vmatpush3.bf16.msra.mxu1 %v2229_v38 }
 0x826   : > { %2941 = vmatprep.subr.bf16.mxu1 %v3033_v33 }
 0x827   : > { %v2925_v41 = vpop.f32.mrf.mxu1 }
 0x829   : > { %v2083_v42 = vpop.f32.mrf.mxu1  ;;  %2942 = vmatpush3.bf16.msra.mxu1 %v2228_v10 }
 0x82b   : > { %v2926_v46 = vpop.f32.mrf.mxu1 }
 0x8e0   : > { %v2036_v47 = vpop.f32.mrf.mxu0 }
 0x8e1   : > { %v2081_v49 = vadd.f32 %v2080_v15, %v2036_v47 }
 0x8e2   : > { %v2919_v50 = vpop.f32.mrf.mxu0 }
 0x8e3   : > { %v2094_v51 = vadd.f32 %v2743_v48, %v2081_v49 }
 0x8e4   : > { %v2039_v52 = vpop.f32.mrf.mxu0 }
 0x8e5   : > { %v2084_v53 = vadd.f32 %v2083_v42, %v2039_v52  ;;  %v2096_v54 = vadd.f32 %v2094_v51, %v3334_v43 }
 0x8e6   : > { %v2920_v55 = vpop.f32.mrf.mxu0 }
 0x8e7   : > { %v2095_v56 = vadd.f32 %v2743_v48, %v2084_v53  ;;  %v2100_v45 = vsel %vm1215_vm2, %v2096_v54, 0.0 }
 0x8e8   : > { %2101 = vadd.xlane.f32.xlu0 %v2100_v45 }
 0x8e9   : > { %v2097_v57 = vadd.f32 %v2095_v56, %v3337_v44  ;;  %v2145_v44 = vld [vmem:[%s3261_s2 + $0x10] sm:$0xff] }
 0x8ea   : > { %v2149_v3 = vpack.c.bf16 %v2146_v17, %v2145_v44 }
 0x8eb   : > { %v2103_v58 = vsel %vm1215_vm2, %v2097_v57, 0.0 }
 0x8ec   : > { %2104 = vadd.xlane.f32.xlu1 %v2103_v58  ;;  %2928 = vmatpush3.bf16.msra.mxu0 %v2149_v3 }
 0x8ed   : > { %2929 = vmatprep.subr.bf16.mxu0 %v3033_v33 }
 0x8f0   : > { %2930 = vmatpush3.bf16.msra.mxu0 %v2148_v6 }
 0x971   : > { %v2102_v59 = vpop.xlane.xlu0 %2101 }
 0x972   : > { %v2107_v60 = vmul.f32 0.03125, %v2102_v59 }
 0x974   : > { %v2109_v61 = vsub.f32 %v2096_v54, %v2107_v60 }
 0x975   : > { %v2105_v62 = vpop.xlane.xlu1 %2104 }
 0x976   : > { %v2108_v9 = vmul.f32 0.03125, %v2105_v62  ;;  %v2111_v43 = vmul.f32 %v2109_v61, %v2109_v61 }
 0x978   : > { %v2110_v63 = vsub.f32 %v2097_v57, %v2108_v9  ;;  %v2113_v0 = vsel %vm1215_vm2, %v2111_v43, 0.0 }
 0x979   : > { %2114 = vadd.xlane.f32.xlu0 %v2113_v0  ;;  %v2748_v0 = vld [vmem:[%s3694_s10] ss:$0 sm:$0xff] }
 0x97a   : > { %v2112_v1 = vmul.f32 %v2110_v63, %v2110_v63 }
 0x97c   : > { %v2116_v2 = vsel %vm1215_vm2, %v2112_v1, 0.0 }
 0x97d   : > { %2117 = vadd.xlane.f32.xlu1 %v2116_v2 }
 0xa02   : > { %v2115_v7 = vpop.xlane.xlu0 %2114 }
 0xa03   : > { %v2119_v8 = vmul.f32 0.03125, %v2115_v7 }
 0xa05   : > { %v2121_v11 = vadd.f32 1e-05, %v2119_v8 }
 0xa06   : > { %v2118_v12 = vpop.xlane.xlu1 %2117 }
 0xa07   : > { %2996 = vrsqrt.f32 %v2121_v11  ;;  %v2120_v13 = vmul.f32 0.03125, %v2118_v12 }
 0xa09   : > { %v2122_v16 = vadd.f32 1e-05, %v2120_v13 }
 0xa0b   : > { %2998 = vrsqrt.f32 %v2122_v16 }
 0xa14   : > { %v2997_v18 = vpop.eup %2996 }
 0xa15   : > { %v2125_v19 = vmul.f32 %v2997_v18, %v2109_v61 }
 0xa17   : > { %v2133_v23 = vmul.f32 %v2744_v20, %v2125_v19 }
 0xa18   : > { %v2999_v21 = vpop.eup %2998 }
 0xa19   : > { %v2126_v22 = vmul.f32 %v2999_v21, %v2110_v63  ;;  %v2141_v26 = vadd.f32 %v2745_v24, %v2133_v23 }
 0xa1b   : > { %v2134_v25 = vmul.f32 %v2744_v20, %v2126_v22 }
 0xa1d   : > { %v2142_v27 = vadd.f32 %v2745_v24, %v2134_v25 }
 0xa1f   : > { %v2147_v28 = vpack.c.bf16 %v2142_v27, %v2141_v26 }
 0xa21   : > { %2932 = vmatmul.mubr.msk.bf16.vlgmr.msra.gmra.mxu0 %vm1215_vm2, %v2147_v28 }
 0xae1   : > { %v2194_v15 = vpop.f32.mrf.mxu0 }
 0xae2   : > { %v2195_v41 = vadd.f32 %v2746_v14, %v2194_v15 }
 0xae3   : > { %v2933_v42 = vpop.f32.mrf.mxu0 }
 0xae4   : > { %v2201_v46 = vmul.f32 %v2195_v41, %v2195_v41 }
 0xae5   : > { %v2197_v47 = vpop.f32.mrf.mxu0 }
 0xae6   : > { %v2203_v48 = vmul.f32 %v2201_v46, %v2195_v41  ;;  %v2198_v49 = vadd.f32 %v2746_v14, %v2197_v47 }
 0xae7   : > { %v2934_v50 = vpop.f32.mrf.mxu0 }
 0xae8   : > { %v2205_v51 = vmul.f32 0.044715, %v2203_v48  ;;  %v2202_v52 = vmul.f32 %v2198_v49, %v2198_v49 }
 0xaea   : > { %v2207_v33 = vadd.f32 %v2205_v51, %v2195_v41  ;;  %v2204_v53 = vmul.f32 %v2202_v52, %v2198_v49 }
 0xaec   : > { %v2209_v54 = vmul.f32 0.7978846, %v2207_v33  ;;  %v2206_v55 = vmul.f32 0.044715, %v2204_v53 }
 0xaee   : > { %3000 = vtanh.f32 %v2209_v54  ;;  %v2208_v56 = vadd.f32 %v2206_v55, %v2198_v49 }
 0xaf0   : > { %v2210_v45 = vmul.f32 0.7978846, %v2208_v56 }
 0xaf2   : > { %3002 = vtanh.f32 %v2210_v45 }
 0xafb   : > { %v3001_v57 = vpop.eup %3000 }
 0xafc   : > { %v2213_v58 = vadd.f32 1.0, %v3001_v57 }
 0xafe   : > { %v2215_v60 = vmul.f32 0.5, %v2213_v58 }
 0xaff   : > { %v3003_v59 = vpop.eup %3002 }
 0xb00   : > { %v2214_v61 = vadd.f32 1.0, %v3003_v59  ;;  %v2217_v9 = vmul.f32 %v2215_v60, %v2195_v41 }
 0xb02   : > { %v2216_v62 = vmul.f32 0.5, %v2214_v61 }
 0xb04   : > { %v2218_v43 = vmul.f32 %v2216_v62, %v2198_v49 }
 0xb06   : > { %v2227_v63 = vpack.c.bf16 %v2218_v43, %v2217_v9 }
 0xb08   : > { %2944 = vmatmul.mubr.msk.bf16.vlgmr.msra.gmra.mxu1 %vm2239_vm6, %v2227_v63 }
 0xbc8   : > { %v2277_v1 = vpop.f32.mrf.mxu1 }
 0xbc9   : > { %v2278_v2 = vadd.f32 %v2748_v0, %v2277_v1 }
 0xbca   : > { %v2945_v44 = vpop.f32.mrf.mxu1 }
 0xbcb   : > { %v2284_v17 = vadd.f32 %v2278_v2, %v2141_v26 }
 0xbcc   : > { %v2280_v3 = vpop.f32.mrf.mxu1 }
 0xbcd   : > { %v2281_v4 = vadd.f32 %v2748_v0, %v2280_v3  ;;  %v2288_v5 = vsel %vm1215_vm2, %v2284_v17, 0.0 }
 0xbce   : > { %2289 = vadd.xlane.f32.xlu0 %v2288_v5  ;;  %v2946_v6 = vpop.f32.mrf.mxu1 }
 0xbcf   : > { %v2285_v7 = vadd.f32 %v2281_v4, %v2142_v27 }
 0xbd1   : > { %v2291_v8 = vsel %vm1215_vm2, %v2285_v7, 0.0 }
 0xbd2   : > { %2292 = vadd.xlane.f32.xlu1 %v2291_v8 }
 0xc57   : > { %v2290_v11 = vpop.xlane.xlu0 %2289 }
 0xc58   : > { %v2294_v12 = vmul.f32 0.03125, %v2290_v11 }
 0xc5a   : > { %v2296_v13 = vsub.f32 %v2284_v17, %v2294_v12 }
 0xc5b   : > { %v2293_v16 = vpop.xlane.xlu1 %2292 }
 0xc5c   : > { %v2295_v18 = vmul.f32 0.03125, %v2293_v16  ;;  %v2298_v19 = vmul.f32 %v2296_v13, %v2296_v13 }
 0xc5e   : > { %v2297_v20 = vsub.f32 %v2285_v7, %v2295_v18  ;;  %v2300_v21 = vsel %vm1215_vm2, %v2298_v19, 0.0 }
 0xc5f   : > { %2301 = vadd.xlane.f32.xlu0 %v2300_v21 }
 0xc60   : > { %v2299_v22 = vmul.f32 %v2297_v20, %v2297_v20 }
 0xc62   : > { %v2303_v23 = vsel %vm1215_vm2, %v2299_v22, 0.0 }
 0xc63   : > { %2304 = vadd.xlane.f32.xlu1 %v2303_v23 }
 0xce8   : > { %v2302_v24 = vpop.xlane.xlu0 %2301 }
 0xce9   : > { %v2306_v25 = vmul.f32 0.03125, %v2302_v24 }
 0xceb   : > { %v2308_v26 = vadd.f32 1e-05, %v2306_v25 }
 0xcec   : > { %v2305_v27 = vpop.xlane.xlu1 %2304 }
 0xced   : > { %3004 = vrsqrt.f32 %v2308_v26  ;;  %v2307_v28 = vmul.f32 0.03125, %v2305_v27 }
 0xcef   : > { %v2309_v29 = vadd.f32 1e-05, %v2307_v28 }
 0xcf1   : > { %3006 = vrsqrt.f32 %v2309_v29 }
 0xcfa   : > { %v3005_v30 = vpop.eup %3004 }
 0xcfb   : > { %v2312_v32 = vmul.f32 %v3005_v30, %v2296_v13 }
 0xcfd   : > { %v2320_v35 = vmul.f32 %v2750_v31, %v2312_v32 }
 0xcfe   : > { %v3007_v36 = vpop.eup %3006 }
 0xcff   : > { %v3544_v37 = vadd.f32 %v2751_v34, %v2320_v35  ;;  %v2313_v38 = vmul.f32 %v3007_v36, %v2297_v20 }
 0xd01   : > { %2330 = vst.msk [vmem:[%s3331_s26] sm:$0xff] %vm1215_vm2, %v3544_v37  ;;  %v2321_v39 = vmul.f32 %v2750_v31, %v2313_v38  ;;  %2334 = sbr.rel (%p2697_p10) target bundleno = 3335 (0xd07), region = 124 }
 0xd03   : > { %v3549_v40 = vadd.f32 %v2751_v34, %v2321_v39 }
 0xd05   : > { %2331 = vst.msk [vmem:[%s3331_s26 + $0x8] sm:$0xff] %vm1215_vm2, %v3549_v40 }
 0xd06   : > { %2336 = vst.msk [vmem:[#allocation2 + $0x10] sm:$0xff] %vm1215_vm2, %v3544_v37  ;;  %2337 = vst.msk [vmem:[#allocation2 + $0x18] sm:$0xff] %vm1215_vm2, %v3549_v40 }
 0xd07 PF: > { %p2753_p12 = scmp.ne.s32.totalorder %s3186_s28, 3 }
 0xd08   : > { %s3696_s1 = sld [smem:[#allocation25_spill]] (!%p2753_p12) }
 0xd09   : > { %2341 = sbr.rel (%p2753_p12) target bundleno = 3762 (0xeb2), region = 128  ;;  %s3697_s11 = sld [smem:[#allocation29_spill]] (!%p2753_p12) }
 0xd0a   : > { %s3698_s25 = sld [smem:[#allocation27_spill]] (!%p2753_p12) }
 0xd0b   : > { %s3699_s13 = sld [smem:[#allocation26_spill]] (!%p2753_p12) }
 0xd0c   : > { %s3700_s22 = sld [smem:[#allocation28_spill]] (!%p2753_p12) }
 0xd0d   : > { %s3701_s2 = sld [smem:[#allocation31_spill]] (!%p2753_p12) }
 0xd0e   : > { %v2351_v10 = vld [vmem:[%s3696_s1 + $0x10] sm:$0xff]  ;;  %v2352_v14 = vld [vmem:[%s3696_s1 + $0x18] sm:$0xff]  ;;  %v2349_v15 = vld [vmem:[%s3696_s1] sm:$0xff]  ;;  %v2343_v41 = vrot.slane %v3549_v40, 7  ;;  %v3035_v42 = vmov 0.0   ;;  %vm3036_vm7 = vmmov 0  }
 0xd0f   : > { %2947 = vmatprep.subr.bf16.mxu0 %v3035_v42  ;;  %v2355_v46 = vpack.c.bf16 %v2352_v14, %v2351_v10  ;;  %v2350_v47 = vld [vmem:[%s3696_s1 + $0x8] sm:$0xff]  ;;  %2951 = vmatprep.mubr.msk.bf16.mxu0 %vm3036_vm7, %v3035_v42  ;;  %vm2345_vm8 = vcmask 1040384   ;;  %vm2347_vm9 = vcmask 254976   ;;  %vm2464_vm10 = vcmask 17408  }
 0xd10   : > { %v2346_v48 = vsel %vm2345_vm8, %v3544_v37, %v2343_v41  ;;  %2955 = vmatprep.subr.bf16.mxu1 %v3035_v42  ;;  %2959 = vmatprep.mubr.msk.bf16.mxu1 %vm3036_vm7, %v3035_v42  ;;  %v2354_v49 = vpack.c.bf16 %v2350_v47, %v2349_v15  ;;  %v2409_v51 = vld [vmem:[%s3698_s25 + $0x10] sm:$0xff]  ;;  %v2410_v52 = vld [vmem:[%s3698_s25 + $0x18] sm:$0xff]  ;;  %v2407_v33 = vld [vmem:[%s3698_s25] sm:$0xff] }
 0xd11   : > { %2948 = vmatpush3.bf16.msra.mxu0 %v2355_v46  ;;  %2348 = vst.msk [vmem:[%s3697_s11] sm:$0x3] %vm2347_vm9, %v2346_v48  ;;  %v2353_v50 = vpack.c.bf16 %v2346_v48, %v2346_v48  ;;  %v2413_v53 = vpack.c.bf16 %v2410_v52, %v2409_v51  ;;  %v2408_v54 = vld [vmem:[%s3698_s25 + $0x8] sm:$0xff]  ;;  %v2754_v56 = vld [vmem:[%s3699_s13] ss:$0 sm:$0xff] }
 0xd12   : > { %2949 = vmatprep.subr.bf16.mxu0 %v3035_v42  ;;  %v2412_v55 = vpack.c.bf16 %v2408_v54, %v2407_v33  ;;  %v2756_v9 = vld [vmem:[%s3700_s22] ss:$0 sm:$0xff] }
 0xd13   : > { %2956 = vmatpush3.bf16.msra.mxu1 %v2413_v53 }
 0xd14   : > { %2957 = vmatprep.subr.bf16.mxu1 %v3035_v42 }
 0xd15   : > { %2950 = vmatpush3.bf16.msra.mxu0 %v2354_v49 }
 0xd17   : > { %2958 = vmatpush3.bf16.msra.mxu1 %v2412_v55 }
 0xd18   : > { %2952 = vmatmul.mubr.msk.bf16.vlgmr.msra.gmra.mxu0 %vm1215_vm2, %v2353_v50 }
 0xdd8   : > { %v2400_v45 = vpop.f32.mrf.mxu0 }
 0xdd9   : > { %v2401_v57 = vadd.f32 %v2754_v56, %v2400_v45 }
 0xdda   : > { %v2953_v58 = vpop.f32.mrf.mxu0 }
 0xddb   : > { %3008 = vtanh.f32 %v2401_v57 }
 0xddc   : > { %v2403_v59 = vpop.f32.mrf.mxu0 }
 0xdde   : > { %v2954_v60 = vpop.f32.mrf.mxu0 }
 0xde8   : > { %v3009_v61 = vpop.eup %3008 }
 0xde9   : > { %v2411_v62 = vpack.c.bf16 %v3009_v61, %v3009_v61 }
 0xdeb   : > { %2960 = vmatmul.mubr.msk.bf16.vlgmr.msra.gmra.mxu1 %vm1215_vm2, %v2411_v62 }
 0xeab   : > { %v2458_v43 = vpop.f32.mrf.mxu1 }
 0xeac   : > { %v2459_v63 = vadd.f32 %v2756_v9, %v2458_v43 }
 0xead   : > { %v2961_v0 = vpop.f32.mrf.mxu1 }
 0xeae   : > { %2465 = vst.msk [vmem:[%s3701_s2] sm:$0x3] %vm2464_vm10, %v2459_v63 }
 0xeaf   : > { %v2461_v1 = vpop.f32.mrf.mxu1 }
 0xeb1   : > { %v2962_v2 = vpop.f32.mrf.mxu1 }
 0xeb2 PF: > { %p2758_p13 = scmp.ne.s32.totalorder %s3186_s28, 4 }
 0xeb3   : > { %s3702_s15 = sld [smem:[#allocation30_spill]] (!%p2758_p13) }
 0xeb4   : > { %2469 = sbr.rel (%p2758_p13) target bundleno = 3773 (0xebd), region = 132 }
 0xeb9   : > { %v2471_v44 = vrot.slane %v3549_v40, 7  ;;  %vm2473_vm11 = vcmask 1040384   ;;  %vm2475_vm12 = vcmask 254976  }
 0xebb   : > { %v2474_v17 = vsel %vm2473_vm11, %v3544_v37, %v2471_v44 }
 0xebc   : > { %2476 = vst.msk [vmem:[%s3702_s15] sm:$0x3] %vm2475_vm12, %v2474_v17 }
 0xebd PF: > { %s3703_s11 = sld [smem:[#allocation6_spill]] }
 0xec3   : > { %s44_s5 = sadd.s32 1, %s3703_s11  }
 0xec4   : > { %p41_p0 = scmp.ge.s32.totalorder %s44_s5, 7  }
 0xec6   :  { %43 = sbr.rel (!%p41_p0) target bundleno = 45 (0x2d), region = 229 }

</bundles_post_ra>
